<compile_context>
chip_gen: v7x
topology: tpu7x:2x2x1
jax: 0.10.0
libtpu: 0.0.40
codegen_flags: <defaults>
</compile_context>

<pallas_src>
import functools

import jax
import jax.numpy as jnp
import numpy as np
from jax.experimental import pallas as pl
from jax.experimental.pallas import tpu as pltpu

# ----------------------------- module constants -----------------------------
AREA_ID_EMBED_DIM = 32
AREA_REGION_ID_EMBED_DIM = 8
COMPANY_ID_EMBED_DIM = 16
COMPENSATION_CURRENCY_CODE_EMBED_DIM = 4
DESCRIPTION_EMBED_DIM = 312
EMBED_DIM = 256
EMPLOYMENT_EMBED_DIM = 4
NAME_EMBED_DIM = 16
N_AREA_ID = 7015
N_AREA_REGION_ID = 107
N_COMPANY_ID = 278913
N_COMPENSATION_CURRENCY_CODE = 11
N_EMPLOYMENT = 6
N_NAME = 18060
N_WORK_EXPERIENCE = 5
N_WORK_SCHEDULE = 6
VACANCY_ID_EMBED_DIM = 0
WORK_EXPERIENCE_EMBED_DIM = 4
WORK_SCHEDULE_EMBED_DIM = 4

IN_DIM = (VACANCY_ID_EMBED_DIM + COMPANY_ID_EMBED_DIM + AREA_ID_EMBED_DIM
          + AREA_REGION_ID_EMBED_DIM + EMPLOYMENT_EMBED_DIM
          + WORK_SCHEDULE_EMBED_DIM + WORK_EXPERIENCE_EMBED_DIM
          + COMPENSATION_CURRENCY_CODE_EMBED_DIM + NAME_EMBED_DIM
          + DESCRIPTION_EMBED_DIM)          # == 400
IN_PAD = 512                                # lane-dense feature width (4x128)


def _round_up(x, m):
    return (x + m - 1) // m * m


# -------------------- Pallas kernel: fused 12-matmul MLP ---------------------
def _mlp_kernel(feat_ref, w_in_ref, b_in_ref, wh_ref, bh_ref, wo_ref, bo_ref,
                out_ref):
    # feats / weights arrive as bf16 (HBM stream + MXU input dtype); biases
    # and MXU accumulation are f32.  Activations are cast to bf16 right after
    # ReLU — bit-identical to casting at the next MXU input, but halves the
    # long-lived activation VMEM.
    def ldot(a, w):
        return jnp.dot(a, w, preferred_element_type=jnp.float32)

    def relu_bf16(v):
        return jnp.maximum(v, 0.0).astype(jnp.bfloat16)

    f = feat_ref[...]                                       # [TB, 512] bf16
    h = relu_bf16(ldot(f, w_in_ref[...]) + b_in_ref[...])   # fc[0]   512 -> 256
    x = relu_bf16(ldot(h, wh_ref[0]) + bh_ref[0])           # fc[1]
    t = relu_bf16(ldot(x, wh_ref[1]) + bh_ref[1])           # fc_2[0]
    y = relu_bf16(ldot(t, wh_ref[2]) + bh_ref[2])           # fc_2[1]
    t = relu_bf16(ldot(y, wh_ref[3]) + bh_ref[3])           # fc_3[0]
    z = relu_bf16(ldot(t, wh_ref[4]) + bh_ref[4])           # fc_3[1]
    t = relu_bf16(ldot(z, wh_ref[5]) + bh_ref[5])           # fc_4[0]
    p = relu_bf16(ldot(t, wh_ref[6]) + bh_ref[6])           # fc_4[1]
    # fc_out(cat([x, y, z, p], dim=1)) as four accumulated K=256 MXU passes
    # against wo viewed as (4, 256, 256): identical FLOPs, no [TB,1024] concat.
    acc = ldot(x, wo_ref[0])
    acc += ldot(y, wo_ref[1])
    acc += ldot(z, wo_ref[2])
    acc += ldot(p, wo_ref[3])
    out_ref[...] = acc + bo_ref[...]


def mlp_forward(feats, params, *, max_tb=512):
    """feats: [B, IN_PAD] bf16 (lane-dense, zero-padded past column IN_DIM)."""
    B = feats.shape[0]
    # Batch tiling:
    #  * tile capped at max_tb (512 keeps TB-sized buffers inside v5e's
    #    16 MiB scoped-VMEM default while amortizing per-grid-step overhead);
    #  * >= 2 tiles whenever B > 8 so the "parallel" axis shards across both
    #    v7x TensorCores (no-op on single-TC v5e/v6e);
    #  * sublane-aligned (multiple of 8) tile rows.
    n_tiles = max(1, pl.cdiv(B, max_tb))
    if B > 8 and n_tiles < 2:
        n_tiles = 2
    tb = _round_up(pl.cdiv(B, n_tiles), 8)
    b_pad = tb * n_tiles
    if b_pad != B:
        feats = jnp.pad(feats, ((0, b_pad - B), (0, 0)))

    # bf16 weight stream; zero-pad w_in rows 400 -> 512; wo viewed (4,256,256).
    w_in = jnp.pad(params["w_in"],
                   ((0, IN_PAD - IN_DIM), (0, 0))).astype(jnp.bfloat16)
    wh = params["wh"].astype(jnp.bfloat16)                        # [7,256,256]
    wo = params["wo"].reshape(4, EMBED_DIM, EMBED_DIM).astype(jnp.bfloat16)
    b_in, bh, bo = params["b_in"], params["bh"], params["bo"]

    out = pl.pallas_call(
        _mlp_kernel,
        out_shape=jax.ShapeDtypeStruct((b_pad, EMBED_DIM), jnp.float32),
        grid=(n_tiles,),
        in_specs=[
            pl.BlockSpec((tb, IN_PAD), lambda i: (i, 0)),                 # feats
            # Constant index_maps -> weight blocks stay VMEM-resident across
            # the batch grid (no per-step re-DMA).
            pl.BlockSpec((IN_PAD, EMBED_DIM), lambda i: (0, 0)),          # w_in
            pl.BlockSpec((1, EMBED_DIM), lambda i: (0, 0)),               # b_in
            pl.BlockSpec((7, EMBED_DIM, EMBED_DIM), lambda i: (0, 0, 0)), # wh
            pl.BlockSpec((7, 1, EMBED_DIM), lambda i: (0, 0, 0)),         # bh
            pl.BlockSpec((4, EMBED_DIM, EMBED_DIM), lambda i: (0, 0, 0)), # wo
            pl.BlockSpec((1, EMBED_DIM), lambda i: (0, 0)),               # bo
        ],
        out_specs=pl.BlockSpec((tb, EMBED_DIM), lambda i: (i, 0)),
        compiler_params=pltpu.CompilerParams(
            dimension_semantics=("parallel",)),
    )(feats, w_in, b_in, wh, bh, wo, bo)
    return out[:B]


# ------------------------------- full forward --------------------------------
def _bag_mean(table, idx_2d):
    # nn.EmbeddingBag(mode='mean') with a 2-D index tensor: gather + mean(1).
    # Left in plain JAX so XLA fuses gather+reduce (no [B,S,D] round-trips).
    return jnp.take(table, idx_2d, axis=0).mean(axis=1)


def embed_multiple_vac_forward(x_idx, desc, params, *, max_tb=512):
    B = x_idx.shape[0]
    feats = jnp.concatenate([
        _bag_mean(params["emb_company_id"], desc["company_id"][x_idx]),
        _bag_mean(params["emb_area_id"], desc["area_id"][x_idx]),
        _bag_mean(params["emb_area_region_id"], desc["area_region_id"][x_idx]),
        _bag_mean(params["emb_work_schedule"], desc["work_schedule"][x_idx]),
        _bag_mean(params["emb_employment"], desc["employment"][x_idx]),
        _bag_mean(params["emb_work_experience"], desc["work_experience"][x_idx]),
        _bag_mean(params["emb_compensation_currency_code"],
                  desc["compensation_currency_code"][x_idx]),
        _bag_mean(params["emb_name"], desc["name"][x_idx]),
        desc["text"][x_idx].mean(axis=1),
        jnp.zeros((B, IN_PAD - IN_DIM), jnp.float32),   # lane-density pad
    ], axis=1).astype(jnp.bfloat16)                     # [B, 512] bf16 stream
    return mlp_forward(feats, params, max_tb=max_tb)


# ------------------------------ pure-JAX reference ---------------------------
def reference_forward(x_idx, desc, params, *, bf16_weights=False):
    feats = jnp.concatenate([
        _bag_mean(params["emb_company_id"], desc["company_id"][x_idx]),
        _bag_mean(params["emb_area_id"], desc["area_id"][x_idx]),
        _bag_mean(params["emb_area_region_id"], desc["area_region_id"][x_idx]),
        _bag_mean(params["emb_work_schedule"], desc["work_schedule"][x_idx]),
        _bag_mean(params["emb_employment"], desc["employment"][x_idx]),
        _bag_mean(params["emb_work_experience"], desc["work_experience"][x_idx]),
        _bag_mean(params["emb_compensation_currency_code"],
                  desc["compensation_currency_code"][x_idx]),
        _bag_mean(params["emb_name"], desc["name"][x_idx]),
        desc["text"][x_idx].mean(axis=1),
    ], axis=1)                                          # [B, 400]

    if bf16_weights:
        to_w = lambda w: w.astype(jnp.bfloat16)
        to_a = lambda a: a.astype(jnp.bfloat16)
    else:
        to_w = lambda w: w
        to_a = lambda a: a
    dot = lambda a, w: jnp.dot(to_a(a), to_w(w),
                               preferred_element_type=jnp.float32)
    relu = lambda v: jnp.maximum(v, 0.0)

    h = relu(dot(feats, params["w_in"]) + params["b_in"])
    x = relu(dot(h, params["wh"][0]) + params["bh"][0])
    t = relu(dot(x, params["wh"][1]) + params["bh"][1])
    y = relu(dot(t, params["wh"][2]) + params["bh"][2])
    t = relu(dot(y, params["wh"][3]) + params["bh"][3])
    z = relu(dot(t, params["wh"][4]) + params["bh"][4])
    t = relu(dot(z, params["wh"][5]) + params["bh"][5])
    p = relu(dot(t, params["wh"][6]) + params["bh"][6])
    xyzp = jnp.concatenate([x, y, z, p], axis=1)
    return dot(xyzp, params["wo"]) + params["bo"]


# ----------------------------------- main ------------------------------------
if __name__ == "__main__":
    key = jax.random.PRNGKey(0)
    ks = iter(jax.random.split(key, 32))
    normal = lambda k, shape, s=0.05: s * jax.random.normal(k, shape, jnp.float32)

    # --- deterministic synthetic parameters (shapes from the module __init__) ---
    params = {
        "emb_company_id": normal(next(ks), (N_COMPANY_ID, COMPANY_ID_EMBED_DIM)),
        "emb_area_id": normal(next(ks), (N_AREA_ID, AREA_ID_EMBED_DIM)),
        "emb_area_region_id": normal(next(ks), (N_AREA_REGION_ID, AREA_REGION_ID_EMBED_DIM)),
        "emb_employment": normal(next(ks), (N_EMPLOYMENT, EMPLOYMENT_EMBED_DIM)),
        "emb_work_schedule": normal(next(ks), (N_WORK_SCHEDULE, WORK_SCHEDULE_EMBED_DIM)),
        "emb_work_experience": normal(next(ks), (N_WORK_EXPERIENCE, WORK_EXPERIENCE_EMBED_DIM)),
        "emb_compensation_currency_code": normal(
            next(ks), (N_COMPENSATION_CURRENCY_CODE, COMPENSATION_CURRENCY_CODE_EMBED_DIM)),
        "emb_name": normal(next(ks), (N_NAME, NAME_EMBED_DIM)),
        # fc first linear: 400 -> 256 (stored as [in, out], i.e. PyTorch weight.T)
        "w_in": normal(next(ks), (IN_DIM, EMBED_DIM)),
        "b_in": normal(next(ks), (1, EMBED_DIM)),
        # remaining 256->256 linears: fc[1], fc_2[0], fc_2[1], fc_3[0], fc_3[1], fc_4[0], fc_4[1]
        "wh": normal(next(ks), (7, EMBED_DIM, EMBED_DIM)),
        "bh": normal(next(ks), (7, 1, EMBED_DIM)),
        # fc_out: 1024 -> 256, stored as one [1024, 256] block
        "wo": normal(next(ks), (4 * EMBED_DIM, EMBED_DIM)),
        "bo": normal(next(ks), (1, EMBED_DIM)),
    }

    # --- synthetic "description" lookup tables (per-vacancy feature ids) ---
    N_VAC, BAG, L_TEXT = 16, 3, 4
    rint = lambda k, hi: jax.random.randint(k, (N_VAC, BAG), 0, hi, jnp.int32)
    desc = {
        "company_id": rint(next(ks), N_COMPANY_ID),
        "area_id": rint(next(ks), N_AREA_ID),
        "area_region_id": rint(next(ks), N_AREA_REGION_ID),
        "employment": rint(next(ks), N_EMPLOYMENT),
        "work_schedule": rint(next(ks), N_WORK_SCHEDULE),
        "work_experience": rint(next(ks), N_WORK_EXPERIENCE),
        "compensation_currency_code": rint(next(ks), N_COMPENSATION_CURRENCY_CODE),
        "name": rint(next(ks), N_NAME),
        "text": normal(next(ks), (N_VAC, L_TEXT, DESCRIPTION_EMBED_DIM), 1.0),
    }

    fwd = jax.jit(embed_multiple_vac_forward)
    ref_bf16_fn = jax.jit(functools.partial(reference_forward, bf16_weights=True))
    ref_f32_fn = jax.jit(reference_forward)

    # Two batch sizes: B=8 exercises the single-tile path, B=40 the multi-tile
    # ("parallel" over >=2 tiles, padded last tile) path.
    for B in (8, 40):
        x = jax.random.randint(jax.random.fold_in(key, B), (B,), 0, N_VAC, jnp.int32)
        out = jax.block_until_ready(fwd(x, desc, params))
        assert out.shape == (B, EMBED_DIM) and out.dtype == jnp.float32

        # Tight check against a reference using the same bf16 weight/activation
        # quantization at every MXU input (f32 accumulation in both).
        ref_bf16 = jax.block_until_ready(ref_bf16_fn(x, desc, params))
        np.testing.assert_allclose(np.asarray(out), np.asarray(ref_bf16),
                                   rtol=5e-3, atol=5e-3)

        # Loose sanity check against exact f32 module semantics (bf16 streaming
        # introduces ~1e-2-level relative error, per review).
        ref_f32 = jax.block_until_ready(ref_f32_fn(x, desc, params))
        np.testing.assert_allclose(np.asarray(out), np.asarray(ref_f32),
                                   rtol=5e-2, atol=5e-2)

    # TODO(synk): for a tiny-batch serving path, weights could be kept
    # VMEM-resident across calls via cross-pallas_call prefetch (sem + VMEM-ref
    # outputs); not done here since the call is correct either way.
    print("KERNEL_OK")
</pallas_src>

<mosaic_0001>
module attributes {stable_mosaic.version = 11 : i64} {
  func.func @_mlp_kernel(%arg0: i32, %arg1: memref<8x512xbf16, #tpu.memory_space<vmem>>, %arg2: memref<512x256xbf16, #tpu.memory_space<vmem>>, %arg3: memref<1x256xf32, #tpu.memory_space<vmem>>, %arg4: memref<7x256x256xbf16, #tpu.memory_space<vmem>>, %arg5: memref<7x1x256xf32, #tpu.memory_space<vmem>>, %arg6: memref<4x256x256xbf16, #tpu.memory_space<vmem>>, %arg7: memref<1x256xf32, #tpu.memory_space<vmem>>, %arg8: memref<8x256xf32, #tpu.memory_space<vmem>>) attributes {dimension_semantics = [#tpu.dimension_semantics<parallel>], iteration_bounds = array<i64: 1>, scalar_prefetch = 0 : i64, scratch_operands = 0 : i64, tpu.core_type = #tpu.core_type<tc>, window_params = [{transform_indices = @transform_0, window_bounds = array<i64: 8, 512>}, {pipeline_mode = #tpu.pipeline_mode<synchronous>, transform_indices = @transform_1, window_bounds = array<i64: 512, 256>}, {pipeline_mode = #tpu.pipeline_mode<synchronous>, transform_indices = @transform_2, window_bounds = array<i64: 1, 256>}, {pipeline_mode = #tpu.pipeline_mode<synchronous>, transform_indices = @transform_3, window_bounds = array<i64: 7, 256, 256>}, {pipeline_mode = #tpu.pipeline_mode<synchronous>, transform_indices = @transform_4, window_bounds = array<i64: 7, 1, 256>}, {pipeline_mode = #tpu.pipeline_mode<synchronous>, transform_indices = @transform_5, window_bounds = array<i64: 4, 256, 256>}, {pipeline_mode = #tpu.pipeline_mode<synchronous>, transform_indices = @transform_6, window_bounds = array<i64: 1, 256>}, {transform_indices = @transform_7, window_bounds = array<i64: 8, 256>}]} {
    %c0 = arith.constant 0 : index
    %c0_0 = arith.constant 0 : index
    %0 = vector.load %arg1[%c0, %c0_0] : memref<8x512xbf16, #tpu.memory_space<vmem>>, vector<8x512xbf16>
    %c0_1 = arith.constant 0 : index
    %c0_2 = arith.constant 0 : index
    %1 = vector.load %arg2[%c0_1, %c0_2] : memref<512x256xbf16, #tpu.memory_space<vmem>>, vector<512x256xbf16>
    %cst = arith.constant dense<0.000000e+00> : vector<8x256xf32>
    %2 = tpu.matmul %0, %1, %cst {dimension_numbers = #tpu.dot_dimension_numbers<[1], [0], [0], [1], [0, 0, 1, 1], [], []>} : vector<8x512xbf16>, vector<512x256xbf16>, vector<8x256xf32> -> vector<8x256xf32>
    %c0_3 = arith.constant 0 : index
    %c0_4 = arith.constant 0 : index
    %3 = vector.load %arg3[%c0_3, %c0_4] : memref<1x256xf32, #tpu.memory_space<vmem>>, vector<1x256xf32>
    %4 = vector.broadcast %3 : vector<1x256xf32> to vector<8x256xf32>
    %5 = arith.addf %2, %4 : vector<8x256xf32>
    %cst_5 = arith.constant 0.000000e+00 : f32
    %6 = vector.broadcast %cst_5 : f32 to vector<8x256xf32>
    %7 = arith.maximumf %5, %6 : vector<8x256xf32>
    %8 = arith.truncf %7 : vector<8x256xf32> to vector<8x256xbf16>
    %c0_6 = arith.constant 0 : index
    %c0_7 = arith.constant 0 : index
    %c0_8 = arith.constant 0 : index
    %9 = vector.load %arg4[%c0_6, %c0_7, %c0_8] : memref<7x256x256xbf16, #tpu.memory_space<vmem>>, vector<1x256x256xbf16>
    %10 = vector.shape_cast %9 : vector<1x256x256xbf16> to vector<256x256xbf16>
    %cst_9 = arith.constant dense<0.000000e+00> : vector<8x256xf32>
    %11 = tpu.matmul %8, %10, %cst_9 {dimension_numbers = #tpu.dot_dimension_numbers<[1], [0], [0], [1], [0, 0, 1, 1], [], []>} : vector<8x256xbf16>, vector<256x256xbf16>, vector<8x256xf32> -> vector<8x256xf32>
    %c0_10 = arith.constant 0 : index
    %c0_11 = arith.constant 0 : index
    %c0_12 = arith.constant 0 : index
    %12 = vector.load %arg5[%c0_10, %c0_11, %c0_12] : memref<7x1x256xf32, #tpu.memory_space<vmem>>, vector<1x1x256xf32>
    %13 = vector.shape_cast %12 : vector<1x1x256xf32> to vector<1x256xf32>
    %14 = vector.broadcast %13 : vector<1x256xf32> to vector<8x256xf32>
    %15 = arith.addf %11, %14 : vector<8x256xf32>
    %cst_13 = arith.constant 0.000000e+00 : f32
    %16 = vector.broadcast %cst_13 : f32 to vector<8x256xf32>
    %17 = arith.maximumf %15, %16 : vector<8x256xf32>
    %18 = arith.truncf %17 : vector<8x256xf32> to vector<8x256xbf16>
    %c1 = arith.constant 1 : index
    %c0_14 = arith.constant 0 : index
    %c0_15 = arith.constant 0 : index
    %19 = vector.load %arg4[%c1, %c0_14, %c0_15] : memref<7x256x256xbf16, #tpu.memory_space<vmem>>, vector<1x256x256xbf16>
    %20 = vector.shape_cast %19 : vector<1x256x256xbf16> to vector<256x256xbf16>
    %cst_16 = arith.constant dense<0.000000e+00> : vector<8x256xf32>
    %21 = tpu.matmul %18, %20, %cst_16 {dimension_numbers = #tpu.dot_dimension_numbers<[1], [0], [0], [1], [0, 0, 1, 1], [], []>} : vector<8x256xbf16>, vector<256x256xbf16>, vector<8x256xf32> -> vector<8x256xf32>
    %c1_17 = arith.constant 1 : index
    %c0_18 = arith.constant 0 : index
    %c0_19 = arith.constant 0 : index
    %22 = vector.load %arg5[%c1_17, %c0_18, %c0_19] : memref<7x1x256xf32, #tpu.memory_space<vmem>>, vector<1x1x256xf32>
    %23 = vector.shape_cast %22 : vector<1x1x256xf32> to vector<1x256xf32>
    %24 = vector.broadcast %23 : vector<1x256xf32> to vector<8x256xf32>
    %25 = arith.addf %21, %24 : vector<8x256xf32>
    %cst_20 = arith.constant 0.000000e+00 : f32
    %26 = vector.broadcast %cst_20 : f32 to vector<8x256xf32>
    %27 = arith.maximumf %25, %26 : vector<8x256xf32>
    %28 = arith.truncf %27 : vector<8x256xf32> to vector<8x256xbf16>
    %c2 = arith.constant 2 : index
    %c0_21 = arith.constant 0 : index
    %c0_22 = arith.constant 0 : index
    %29 = vector.load %arg4[%c2, %c0_21, %c0_22] : memref<7x256x256xbf16, #tpu.memory_space<vmem>>, vector<1x256x256xbf16>
    %30 = vector.shape_cast %29 : vector<1x256x256xbf16> to vector<256x256xbf16>
    %cst_23 = arith.constant dense<0.000000e+00> : vector<8x256xf32>
    %31 = tpu.matmul %28, %30, %cst_23 {dimension_numbers = #tpu.dot_dimension_numbers<[1], [0], [0], [1], [0, 0, 1, 1], [], []>} : vector<8x256xbf16>, vector<256x256xbf16>, vector<8x256xf32> -> vector<8x256xf32>
    %c2_24 = arith.constant 2 : index
    %c0_25 = arith.constant 0 : index
    %c0_26 = arith.constant 0 : index
    %32 = vector.load %arg5[%c2_24, %c0_25, %c0_26] : memref<7x1x256xf32, #tpu.memory_space<vmem>>, vector<1x1x256xf32>
    %33 = vector.shape_cast %32 : vector<1x1x256xf32> to vector<1x256xf32>
    %34 = vector.broadcast %33 : vector<1x256xf32> to vector<8x256xf32>
    %35 = arith.addf %31, %34 : vector<8x256xf32>
    %cst_27 = arith.constant 0.000000e+00 : f32
    %36 = vector.broadcast %cst_27 : f32 to vector<8x256xf32>
    %37 = arith.maximumf %35, %36 : vector<8x256xf32>
    %38 = arith.truncf %37 : vector<8x256xf32> to vector<8x256xbf16>
    %c3 = arith.constant 3 : index
    %c0_28 = arith.constant 0 : index
    %c0_29 = arith.constant 0 : index
    %39 = vector.load %arg4[%c3, %c0_28, %c0_29] : memref<7x256x256xbf16, #tpu.memory_space<vmem>>, vector<1x256x256xbf16>
    %40 = vector.shape_cast %39 : vector<1x256x256xbf16> to vector<256x256xbf16>
    %cst_30 = arith.constant dense<0.000000e+00> : vector<8x256xf32>
    %41 = tpu.matmul %38, %40, %cst_30 {dimension_numbers = #tpu.dot_dimension_numbers<[1], [0], [0], [1], [0, 0, 1, 1], [], []>} : vector<8x256xbf16>, vector<256x256xbf16>, vector<8x256xf32> -> vector<8x256xf32>
    %c3_31 = arith.constant 3 : index
    %c0_32 = arith.constant 0 : index
    %c0_33 = arith.constant 0 : index
    %42 = vector.load %arg5[%c3_31, %c0_32, %c0_33] : memref<7x1x256xf32, #tpu.memory_space<vmem>>, vector<1x1x256xf32>
    %43 = vector.shape_cast %42 : vector<1x1x256xf32> to vector<1x256xf32>
    %44 = vector.broadcast %43 : vector<1x256xf32> to vector<8x256xf32>
    %45 = arith.addf %41, %44 : vector<8x256xf32>
    %cst_34 = arith.constant 0.000000e+00 : f32
    %46 = vector.broadcast %cst_34 : f32 to vector<8x256xf32>
    %47 = arith.maximumf %45, %46 : vector<8x256xf32>
    %48 = arith.truncf %47 : vector<8x256xf32> to vector<8x256xbf16>
    %c4 = arith.constant 4 : index
    %c0_35 = arith.constant 0 : index
    %c0_36 = arith.constant 0 : index
    %49 = vector.load %arg4[%c4, %c0_35, %c0_36] : memref<7x256x256xbf16, #tpu.memory_space<vmem>>, vector<1x256x256xbf16>
    %50 = vector.shape_cast %49 : vector<1x256x256xbf16> to vector<256x256xbf16>
    %cst_37 = arith.constant dense<0.000000e+00> : vector<8x256xf32>
    %51 = tpu.matmul %48, %50, %cst_37 {dimension_numbers = #tpu.dot_dimension_numbers<[1], [0], [0], [1], [0, 0, 1, 1], [], []>} : vector<8x256xbf16>, vector<256x256xbf16>, vector<8x256xf32> -> vector<8x256xf32>
    %c4_38 = arith.constant 4 : index
    %c0_39 = arith.constant 0 : index
    %c0_40 = arith.constant 0 : index
    %52 = vector.load %arg5[%c4_38, %c0_39, %c0_40] : memref<7x1x256xf32, #tpu.memory_space<vmem>>, vector<1x1x256xf32>
    %53 = vector.shape_cast %52 : vector<1x1x256xf32> to vector<1x256xf32>
    %54 = vector.broadcast %53 : vector<1x256xf32> to vector<8x256xf32>
    %55 = arith.addf %51, %54 : vector<8x256xf32>
    %cst_41 = arith.constant 0.000000e+00 : f32
    %56 = vector.broadcast %cst_41 : f32 to vector<8x256xf32>
    %57 = arith.maximumf %55, %56 : vector<8x256xf32>
    %58 = arith.truncf %57 : vector<8x256xf32> to vector<8x256xbf16>
    %c5 = arith.constant 5 : index
    %c0_42 = arith.constant 0 : index
    %c0_43 = arith.constant 0 : index
    %59 = vector.load %arg4[%c5, %c0_42, %c0_43] : memref<7x256x256xbf16, #tpu.memory_space<vmem>>, vector<1x256x256xbf16>
    %60 = vector.shape_cast %59 : vector<1x256x256xbf16> to vector<256x256xbf16>
    %cst_44 = arith.constant dense<0.000000e+00> : vector<8x256xf32>
    %61 = tpu.matmul %58, %60, %cst_44 {dimension_numbers = #tpu.dot_dimension_numbers<[1], [0], [0], [1], [0, 0, 1, 1], [], []>} : vector<8x256xbf16>, vector<256x256xbf16>, vector<8x256xf32> -> vector<8x256xf32>
    %c5_45 = arith.constant 5 : index
    %c0_46 = arith.constant 0 : index
    %c0_47 = arith.constant 0 : index
    %62 = vector.load %arg5[%c5_45, %c0_46, %c0_47] : memref<7x1x256xf32, #tpu.memory_space<vmem>>, vector<1x1x256xf32>
    %63 = vector.shape_cast %62 : vector<1x1x256xf32> to vector<1x256xf32>
    %64 = vector.broadcast %63 : vector<1x256xf32> to vector<8x256xf32>
    %65 = arith.addf %61, %64 : vector<8x256xf32>
    %cst_48 = arith.constant 0.000000e+00 : f32
    %66 = vector.broadcast %cst_48 : f32 to vector<8x256xf32>
    %67 = arith.maximumf %65, %66 : vector<8x256xf32>
    %68 = arith.truncf %67 : vector<8x256xf32> to vector<8x256xbf16>
    %c6 = arith.constant 6 : index
    %c0_49 = arith.constant 0 : index
    %c0_50 = arith.constant 0 : index
    %69 = vector.load %arg4[%c6, %c0_49, %c0_50] : memref<7x256x256xbf16, #tpu.memory_space<vmem>>, vector<1x256x256xbf16>
    %70 = vector.shape_cast %69 : vector<1x256x256xbf16> to vector<256x256xbf16>
    %cst_51 = arith.constant dense<0.000000e+00> : vector<8x256xf32>
    %71 = tpu.matmul %68, %70, %cst_51 {dimension_numbers = #tpu.dot_dimension_numbers<[1], [0], [0], [1], [0, 0, 1, 1], [], []>} : vector<8x256xbf16>, vector<256x256xbf16>, vector<8x256xf32> -> vector<8x256xf32>
    %c6_52 = arith.constant 6 : index
    %c0_53 = arith.constant 0 : index
    %c0_54 = arith.constant 0 : index
    %72 = vector.load %arg5[%c6_52, %c0_53, %c0_54] : memref<7x1x256xf32, #tpu.memory_space<vmem>>, vector<1x1x256xf32>
    %73 = vector.shape_cast %72 : vector<1x1x256xf32> to vector<1x256xf32>
    %74 = vector.broadcast %73 : vector<1x256xf32> to vector<8x256xf32>
    %75 = arith.addf %71, %74 : vector<8x256xf32>
    %cst_55 = arith.constant 0.000000e+00 : f32
    %76 = vector.broadcast %cst_55 : f32 to vector<8x256xf32>
    %77 = arith.maximumf %75, %76 : vector<8x256xf32>
    %78 = arith.truncf %77 : vector<8x256xf32> to vector<8x256xbf16>
    %c0_56 = arith.constant 0 : index
    %c0_57 = arith.constant 0 : index
    %c0_58 = arith.constant 0 : index
    %79 = vector.load %arg6[%c0_56, %c0_57, %c0_58] : memref<4x256x256xbf16, #tpu.memory_space<vmem>>, vector<1x256x256xbf16>
    %80 = vector.shape_cast %79 : vector<1x256x256xbf16> to vector<256x256xbf16>
    %cst_59 = arith.constant dense<0.000000e+00> : vector<8x256xf32>
    %81 = tpu.matmul %18, %80, %cst_59 {dimension_numbers = #tpu.dot_dimension_numbers<[1], [0], [0], [1], [0, 0, 1, 1], [], []>} : vector<8x256xbf16>, vector<256x256xbf16>, vector<8x256xf32> -> vector<8x256xf32>
    %c1_60 = arith.constant 1 : index
    %c0_61 = arith.constant 0 : index
    %c0_62 = arith.constant 0 : index
    %82 = vector.load %arg6[%c1_60, %c0_61, %c0_62] : memref<4x256x256xbf16, #tpu.memory_space<vmem>>, vector<1x256x256xbf16>
    %83 = vector.shape_cast %82 : vector<1x256x256xbf16> to vector<256x256xbf16>
    %cst_63 = arith.constant dense<0.000000e+00> : vector<8x256xf32>
    %84 = tpu.matmul %38, %83, %cst_63 {dimension_numbers = #tpu.dot_dimension_numbers<[1], [0], [0], [1], [0, 0, 1, 1], [], []>} : vector<8x256xbf16>, vector<256x256xbf16>, vector<8x256xf32> -> vector<8x256xf32>
    %85 = arith.addf %81, %84 : vector<8x256xf32>
    %c2_64 = arith.constant 2 : index
    %c0_65 = arith.constant 0 : index
    %c0_66 = arith.constant 0 : index
    %86 = vector.load %arg6[%c2_64, %c0_65, %c0_66] : memref<4x256x256xbf16, #tpu.memory_space<vmem>>, vector<1x256x256xbf16>
    %87 = vector.shape_cast %86 : vector<1x256x256xbf16> to vector<256x256xbf16>
    %cst_67 = arith.constant dense<0.000000e+00> : vector<8x256xf32>
    %88 = tpu.matmul %58, %87, %cst_67 {dimension_numbers = #tpu.dot_dimension_numbers<[1], [0], [0], [1], [0, 0, 1, 1], [], []>} : vector<8x256xbf16>, vector<256x256xbf16>, vector<8x256xf32> -> vector<8x256xf32>
    %89 = arith.addf %85, %88 : vector<8x256xf32>
    %c3_68 = arith.constant 3 : index
    %c0_69 = arith.constant 0 : index
    %c0_70 = arith.constant 0 : index
    %90 = vector.load %arg6[%c3_68, %c0_69, %c0_70] : memref<4x256x256xbf16, #tpu.memory_space<vmem>>, vector<1x256x256xbf16>
    %91 = vector.shape_cast %90 : vector<1x256x256xbf16> to vector<256x256xbf16>
    %cst_71 = arith.constant dense<0.000000e+00> : vector<8x256xf32>
    %92 = tpu.matmul %78, %91, %cst_71 {dimension_numbers = #tpu.dot_dimension_numbers<[1], [0], [0], [1], [0, 0, 1, 1], [], []>} : vector<8x256xbf16>, vector<256x256xbf16>, vector<8x256xf32> -> vector<8x256xf32>
    %93 = arith.addf %89, %92 : vector<8x256xf32>
    %c0_72 = arith.constant 0 : index
    %c0_73 = arith.constant 0 : index
    %94 = vector.load %arg7[%c0_72, %c0_73] : memref<1x256xf32, #tpu.memory_space<vmem>>, vector<1x256xf32>
    %95 = vector.broadcast %94 : vector<1x256xf32> to vector<8x256xf32>
    %96 = arith.addf %93, %95 : vector<8x256xf32>
    %c0_74 = arith.constant 0 : index
    %c0_75 = arith.constant 0 : index
    %97 = vector.load %arg8[%c0_74, %c0_75] : memref<8x256xf32, #tpu.memory_space<vmem>>, vector<8x256xf32>
    tpu.vector_store %arg8[%c0_74, %c0_75], %96 {strides = array<i32>} : memref<8x256xf32, #tpu.memory_space<vmem>>, vector<8x256xf32>,
    return
  }
  func.func @transform_0(%arg0: i32) -> (i32, i32) {
    %c0_i32 = arith.constant 0 : i32
    %c0_i32_0 = arith.constant 0 : i32
    return %arg0, %c0_i32 : i32, i32
  }
  func.func @transform_1(%arg0: i32) -> (i32, i32) {
    %c0_i32 = arith.constant 0 : i32
    %c0_i32_0 = arith.constant 0 : i32
    %c0_i32_1 = arith.constant 0 : i32
    return %c0_i32, %c0_i32_0 : i32, i32
  }
  func.func @transform_2(%arg0: i32) -> (i32, i32) {
    %c0_i32 = arith.constant 0 : i32
    %c0_i32_0 = arith.constant 0 : i32
    %c0_i32_1 = arith.constant 0 : i32
    return %c0_i32, %c0_i32_0 : i32, i32
  }
  func.func @transform_3(%arg0: i32) -> (i32, i32, i32) {
    %c0_i32 = arith.constant 0 : i32
    %c0_i32_0 = arith.constant 0 : i32
    %c0_i32_1 = arith.constant 0 : i32
    %c0_i32_2 = arith.constant 0 : i32
    return %c0_i32, %c0_i32_0, %c0_i32_1 : i32, i32, i32
  }
  func.func @transform_4(%arg0: i32) -> (i32, i32, i32) {
    %c0_i32 = arith.constant 0 : i32
    %c0_i32_0 = arith.constant 0 : i32
    %c0_i32_1 = arith.constant 0 : i32
    %c0_i32_2 = arith.constant 0 : i32
    return %c0_i32, %c0_i32_0, %c0_i32_1 : i32, i32, i32
  }
  func.func @transform_5(%arg0: i32) -> (i32, i32, i32) {
    %c0_i32 = arith.constant 0 : i32
    %c0_i32_0 = arith.constant 0 : i32
    %c0_i32_1 = arith.constant 0 : i32
    %c0_i32_2 = arith.constant 0 : i32
    return %c0_i32, %c0_i32_0, %c0_i32_1 : i32, i32, i32
  }
  func.func @transform_6(%arg0: i32) -> (i32, i32) {
    %c0_i32 = arith.constant 0 : i32
    %c0_i32_0 = arith.constant 0 : i32
    %c0_i32_1 = arith.constant 0 : i32
    return %c0_i32, %c0_i32_0 : i32, i32
  }
  func.func @transform_7(%arg0: i32) -> (i32, i32) {
    %c0_i32 = arith.constant 0 : i32
    %c0_i32_0 = arith.constant 0 : i32
    return %arg0, %c0_i32 : i32, i32
  }
}

</mosaic_0001>

<bundles_post_ra>
// kernel: embed_multiple_vac_forward.1
= control target key start
LH: loop header
LB: loop body
LE: loop exit
PB: predicated region body
PF: predicated region fallthrough
CT: control target
= control target key end

     0   :  { %s6020_s0 = inlined_call_operand.vmem [shape: bf16[8,512], index: 0, kind: input, shape index: {}]   ;;  %s6021_s1 = inlined_call_operand.vmem [shape: bf16[512,256], index: 1, kind: input, shape index: {}]   ;;  %s6022_s2 = inlined_call_operand.vmem [shape: f32[1,256], index: 2, kind: input, shape index: {}]   ;;  %s6023_s3 = inlined_call_operand.vmem [shape: bf16[7,256,256], index: 3, kind: input, shape index: {}]   ;;  %s6024_s4 = inlined_call_operand.vmem [shape: f32[7,1,256], index: 4, kind: input, shape index: {}]   ;;  %s6025_s5 = inlined_call_operand.vmem [shape: bf16[4,256,256], index: 5, kind: input, shape index: {}]   ;;  %s6026_s6 = inlined_call_operand.vmem [shape: f32[1,256], index: 6, kind: input, shape index: {}]   ;;  %s6027_s7 = inlined_call_operand.hbm [shape: f32[8,256], index: 7, kind: output, shape index: {}]  }
   0x1   :  { %v3970_v0 = vld [vmem:[%s6021_s1 + $0x4] ss:$8 sps:$4 sm:$0xff]   ;;  %v3972_v1 = vld [vmem:[%s6021_s1] ss:$8 sps:$4 sm:$0xff]   ;;  %v3973_v2 = vld [vmem:[%s6021_s1 + $0x14] ss:$8 sps:$4 sm:$0xff]  }
   0x2   :  { %439 = vmatprep.subr.bf16.mxu0 %v3970_v0  ;;  %v3975_v3 = vld [vmem:[%s6021_s1 + $0x10] ss:$8 sps:$4 sm:$0xff]   ;;  %v3976_v4 = vld [vmem:[%s6021_s1 + $0x24] ss:$8 sps:$4 sm:$0xff]   ;;  %v3978_v5 = vld [vmem:[%s6021_s1 + $0x20] ss:$8 sps:$4 sm:$0xff]  }
   0x3   :  { %440 = vmatpush1.bf16.msra.mxu0 %v3972_v1  ;;  %v3979_v6 = vld [vmem:[%s6021_s1 + $0x34] ss:$8 sps:$4 sm:$0xff]   ;;  %v3981_v7 = vld [vmem:[%s6021_s1 + $0x30] ss:$8 sps:$4 sm:$0xff]   ;;  %v3982_v8 = vld [vmem:[%s6021_s1 + $0x44] ss:$8 sps:$4 sm:$0xff]  }
   0x4   :  { %441 = vmatprep.subr.bf16.mxu0 %v3973_v2  ;;  %v3984_v9 = vld [vmem:[%s6021_s1 + $0x40] ss:$8 sps:$4 sm:$0xff]   ;;  %v3985_v10 = vld [vmem:[%s6021_s1 + $0x54] ss:$8 sps:$4 sm:$0xff]   ;;  %v3987_v11 = vld [vmem:[%s6021_s1 + $0x50] ss:$8 sps:$4 sm:$0xff]  }
   0x5   :  { %v3988_v12 = vld [vmem:[%s6021_s1 + $0x64] ss:$8 sps:$4 sm:$0xff]   ;;  %v3990_v15 = vld [vmem:[%s6021_s1 + $0x60] ss:$8 sps:$4 sm:$0xff]   ;;  %v3991_v16 = vld [vmem:[%s6021_s1 + $0x74] ss:$8 sps:$4 sm:$0xff]  }
   0x6   :  { %v4705_v13 = vld [vmem:[%s6020_s0] sm:$0xff]  ;;  %v3993_v17 = vld [vmem:[%s6021_s1 + $0x70] ss:$8 sps:$4 sm:$0xff]   ;;  %v3997_v20 = vld [vmem:[%s6021_s1 + $0x94] ss:$8 sps:$4 sm:$0xff]  }
   0x7   :  { %442 = vmatpush1.bf16.msra.mxu0 %v3975_v3  ;;  %v3250_v14 = vcombine.high %v4705_v13, %v4705_v13  ;;  %v3994_v18 = vld [vmem:[%s6021_s1 + $0x84] ss:$8 sps:$4 sm:$0xff]   ;;  %v3996_v19 = vld [vmem:[%s6021_s1 + $0x80] ss:$8 sps:$4 sm:$0xff]   ;;  %v3999_v21 = vld [vmem:[%s6021_s1 + $0x90] ss:$8 sps:$4 sm:$0xff]   ;;  %v3249_v48 = vcombine.low %v4705_v13, %v4705_v13 }
   0x8   :  { %443 = vmatprep.subr.bf16.mxu0 %v3976_v4  ;;  %v4000_v22 = vld [vmem:[%s6021_s1 + $0xa4] ss:$8 sps:$4 sm:$0xff]   ;;  %v4002_v23 = vld [vmem:[%s6021_s1 + $0xa0] ss:$8 sps:$4 sm:$0xff]   ;;  %v4003_v24 = vld [vmem:[%s6021_s1 + $0xb4] ss:$8 sps:$4 sm:$0xff]  }
   0x9   :  { %471 = vmatprep.mubr.bf16.mxu0 %v3250_v14  ;;  %v4005_v25 = vld [vmem:[%s6021_s1 + $0xb0] ss:$8 sps:$4 sm:$0xff]   ;;  %v4006_v26 = vld [vmem:[%s6021_s1 + $0xc4] ss:$8 sps:$4 sm:$0xff]   ;;  %v4072_v28 = vld [vmem:[%s6023_s3] ss:$8 sps:$4 sm:$0xff]  }
   0xa   :  { %v4070_v27 = vld [vmem:[%s6023_s3 + $0x4] ss:$8 sps:$4 sm:$0xff]   ;;  %v4073_v29 = vld [vmem:[%s6023_s3 + $0x14] ss:$8 sps:$4 sm:$0xff]   ;;  %v4008_v30 = vld [vmem:[%s6021_s1 + $0xc0] ss:$8 sps:$4 sm:$0xff]  }
   0xb   :  { %444 = vmatpush1.bf16.msra.mxu0 %v3978_v5  ;;  %729 = vmatprep.subr.bf16.mxu1 %v4070_v27  ;;  %v4075_v31 = vld [vmem:[%s6023_s3 + $0x10] ss:$8 sps:$4 sm:$0xff]   ;;  %v4009_v32 = vld [vmem:[%s6021_s1 + $0xd4] ss:$8 sps:$4 sm:$0xff]   ;;  %v4076_v33 = vld [vmem:[%s6023_s3 + $0x24] ss:$8 sps:$4 sm:$0xff]  }
   0xc   :  { %445 = vmatprep.subr.bf16.mxu0 %v3979_v6  ;;  %730 = vmatpush1.bf16.msra.mxu1 %v4072_v28  ;;  %v4011_v34 = vld [vmem:[%s6021_s1 + $0xd0] ss:$8 sps:$4 sm:$0xff]   ;;  %v4078_v35 = vld [vmem:[%s6023_s3 + $0x20] ss:$8 sps:$4 sm:$0xff]   ;;  %v4012_v36 = vld [vmem:[%s6021_s1 + $0xe4] ss:$8 sps:$4 sm:$0xff]  }
   0xd   :  { %731 = vmatprep.subr.bf16.mxu1 %v4073_v29  ;;  %v4079_v37 = vld [vmem:[%s6023_s3 + $0x34] ss:$8 sps:$4 sm:$0xff]   ;;  %v4014_v38 = vld [vmem:[%s6021_s1 + $0xe0] ss:$8 sps:$4 sm:$0xff]   ;;  %v4081_v39 = vld [vmem:[%s6023_s3 + $0x30] ss:$8 sps:$4 sm:$0xff]  }
   0xe   :  { %v4015_v40 = vld [vmem:[%s6021_s1 + $0xf4] ss:$8 sps:$4 sm:$0xff]   ;;  %v4082_v41 = vld [vmem:[%s6023_s3 + $0x44] ss:$8 sps:$4 sm:$0xff]   ;;  %v4017_v42 = vld [vmem:[%s6021_s1 + $0xf0] ss:$8 sps:$4 sm:$0xff]  }
   0xf   :  { %446 = vmatpush1.bf16.msra.mxu0 %v3981_v7  ;;  %v4022_v43 = vld [vmem:[%s6021_s1 + $0x104] ss:$8 sps:$4 sm:$0xff]   ;;  %v4084_v44 = vld [vmem:[%s6023_s3 + $0x40] ss:$8 sps:$4 sm:$0xff]   ;;  %v4085_v46 = vld [vmem:[%s6023_s3 + $0x54] ss:$8 sps:$4 sm:$0xff]  }
  0x10   :  { %447 = vmatprep.subr.bf16.mxu0 %v3982_v8  ;;  %732 = vmatpush1.bf16.msra.mxu1 %v4075_v31  ;;  %v4802_v45 = vld [vmem:[%s6020_s0 + $0x8] sm:$0xff]  ;;  %v4025_v49 = vld [vmem:[%s6021_s1 + $0x114] ss:$8 sps:$4 sm:$0xff]   ;;  %v4087_v50 = vld [vmem:[%s6023_s3 + $0x50] ss:$8 sps:$4 sm:$0xff]  }
  0x11   :  { %733 = vmatprep.subr.bf16.mxu1 %v4076_v33  ;;  %v4020_v47 = vld [vmem:[%s6021_s1 + $0x100] ss:$8 sps:$4 sm:$0xff]   ;;  %v3252_v51 = vcombine.high %v4802_v45, %v4802_v45  ;;  %v4088_v52 = vld [vmem:[%s6023_s3 + $0x64] ss:$8 sps:$4 sm:$0xff]   ;;  %v4023_v53 = vld [vmem:[%s6021_s1 + $0x110] ss:$8 sps:$4 sm:$0xff]   ;;  %v3251_v33 = vcombine.low %v4802_v45, %v4802_v45 }
  0x12   :  { %v4028_v54 = vld [vmem:[%s6021_s1 + $0x124] ss:$8 sps:$4 sm:$0xff]   ;;  %v4090_v55 = vld [vmem:[%s6023_s3 + $0x60] ss:$8 sps:$4 sm:$0xff]   ;;  %v4091_v56 = vld [vmem:[%s6023_s3 + $0x74] ss:$8 sps:$4 sm:$0xff]  }
  0x13   :  { %448 = vmatpush1.bf16.msra.mxu0 %v3984_v9  ;;  %v4026_v57 = vld [vmem:[%s6021_s1 + $0x120] ss:$8 sps:$4 sm:$0xff]   ;;  %v4031_v58 = vld [vmem:[%s6021_s1 + $0x134] ss:$8 sps:$4 sm:$0xff]   ;;  %v4093_v59 = vld [vmem:[%s6023_s3 + $0x70] ss:$8 sps:$4 sm:$0xff]  }
  0x14   :  { %449 = vmatprep.subr.bf16.mxu0 %v3985_v10  ;;  %734 = vmatpush1.bf16.msra.mxu1 %v4078_v35  ;;  %v4094_v60 = vld [vmem:[%s6023_s3 + $0x84] ss:$8 sps:$4 sm:$0xff]   ;;  %v4029_v61 = vld [vmem:[%s6021_s1 + $0x130] ss:$8 sps:$4 sm:$0xff]   ;;  %v4096_v63 = vld [vmem:[%s6023_s3 + $0x80] ss:$8 sps:$4 sm:$0xff]  }
  0x15   :  { %735 = vmatprep.subr.bf16.mxu1 %v4079_v37  ;;  %v4034_v62 = vld [vmem:[%s6021_s1 + $0x144] ss:$8 sps:$4 sm:$0xff]   ;;  %v4097_v0 = vld [vmem:[%s6023_s3 + $0x94] ss:$8 sps:$4 sm:$0xff]   ;;  %v4032_v1 = vld [vmem:[%s6021_s1 + $0x140] ss:$8 sps:$4 sm:$0xff]  }
  0x16   :  { %v4037_v2 = vld [vmem:[%s6021_s1 + $0x154] ss:$8 sps:$4 sm:$0xff]   ;;  %v4099_v3 = vld [vmem:[%s6023_s3 + $0x90] ss:$8 sps:$4 sm:$0xff]   ;;  %v4100_v4 = vld [vmem:[%s6023_s3 + $0xa4] ss:$8 sps:$4 sm:$0xff]  }
  0x17   :  { %450 = vmatpush1.bf16.msra.mxu0 %v3987_v11  ;;  %v4035_v5 = vld [vmem:[%s6021_s1 + $0x150] ss:$8 sps:$4 sm:$0xff]   ;;  %v4040_v6 = vld [vmem:[%s6021_s1 + $0x164] ss:$8 sps:$4 sm:$0xff]   ;;  %v4102_v7 = vld [vmem:[%s6023_s3 + $0xa0] ss:$8 sps:$4 sm:$0xff]  }
  0x18   :  { %451 = vmatprep.subr.bf16.mxu0 %v3988_v12  ;;  %736 = vmatpush1.bf16.msra.mxu1 %v4081_v39  ;;  %v4103_v8 = vld [vmem:[%s6023_s3 + $0xb4] ss:$8 sps:$4 sm:$0xff]   ;;  %v4038_v9 = vld [vmem:[%s6021_s1 + $0x160] ss:$8 sps:$4 sm:$0xff]   ;;  %v4105_v11 = vld [vmem:[%s6023_s3 + $0xb0] ss:$8 sps:$4 sm:$0xff]  }
  0x19   :  { %737 = vmatprep.subr.bf16.mxu1 %v4082_v41  ;;  %v4043_v10 = vld [vmem:[%s6021_s1 + $0x174] ss:$8 sps:$4 sm:$0xff]   ;;  %v4106_v12 = vld [vmem:[%s6023_s3 + $0xc4] ss:$8 sps:$4 sm:$0xff]   ;;  %v4041_v13 = vld [vmem:[%s6021_s1 + $0x170] ss:$8 sps:$4 sm:$0xff]  }
  0x1a   :  { %v4046_v14 = vld [vmem:[%s6021_s1 + $0x184] ss:$8 sps:$4 sm:$0xff]   ;;  %v4061_v27 = vld [vmem:[%s6021_s1 + $0x1d4] ss:$8 sps:$4 sm:$0xff]   ;;  %v4059_v28 = vld [vmem:[%s6021_s1 + $0x1d0] ss:$8 sps:$4 sm:$0xff]  }
  0x1b   :  { %452 = vmatpush1.bf16.msra.mxu0 %v3990_v15  ;;  %v4108_v15 = vld [vmem:[%s6023_s3 + $0xc0] ss:$8 sps:$4 sm:$0xff]   ;;  %v4064_v29 = vld [vmem:[%s6021_s1 + $0x1e4] ss:$8 sps:$4 sm:$0xff]   ;;  %v4067_v31 = vld [vmem:[%s6021_s1 + $0x1f4] ss:$8 sps:$4 sm:$0xff]  }
  0x1c   :  { %453 = vmatprep.subr.bf16.mxu0 %v3991_v16  ;;  %738 = vmatpush1.bf16.msra.mxu1 %v4084_v44  ;;  %v4109_v16 = vld [vmem:[%s6023_s3 + $0xd4] ss:$8 sps:$4 sm:$0xff]  }
  0x1d   :  { %739 = vmatprep.subr.bf16.mxu1 %v4085_v46 }
  0x1f   :  { %454 = vmatpush1.bf16.msra.mxu0 %v3993_v17  ;;  %v4044_v17 = vld [vmem:[%s6021_s1 + $0x180] ss:$8 sps:$4 sm:$0xff]  }
  0x20   :  { %455 = vmatprep.subr.bf16.mxu0 %v3994_v18  ;;  %740 = vmatpush1.bf16.msra.mxu1 %v4087_v50  ;;  %v4049_v18 = vld [vmem:[%s6021_s1 + $0x194] ss:$8 sps:$4 sm:$0xff]  }
  0x21   :  { %741 = vmatprep.subr.bf16.mxu1 %v4088_v52 }
  0x23   :  { %456 = vmatpush1.bf16.msra.mxu0 %v3996_v19  ;;  %v4111_v19 = vld [vmem:[%s6023_s3 + $0xd0] ss:$8 sps:$4 sm:$0xff]  }
  0x24   :  { %457 = vmatprep.subr.bf16.mxu0 %v3997_v20  ;;  %742 = vmatpush1.bf16.msra.mxu1 %v4090_v55  ;;  %v4047_v20 = vld [vmem:[%s6021_s1 + $0x190] ss:$8 sps:$4 sm:$0xff]  }
  0x25   :  { %743 = vmatprep.subr.bf16.mxu1 %v4091_v56 }
  0x27   :  { %458 = vmatpush1.bf16.msra.mxu0 %v3999_v21  ;;  %v4052_v21 = vld [vmem:[%s6021_s1 + $0x1a4] ss:$8 sps:$4 sm:$0xff]  }
  0x28   :  { %459 = vmatprep.subr.bf16.mxu0 %v4000_v22  ;;  %744 = vmatpush1.bf16.msra.mxu1 %v4093_v59  ;;  %v4050_v22 = vld [vmem:[%s6021_s1 + $0x1a0] ss:$8 sps:$4 sm:$0xff]  }
  0x29   :  { %745 = vmatprep.subr.bf16.mxu1 %v4094_v60 }
  0x2b   :  { %460 = vmatpush1.bf16.msra.mxu0 %v4002_v23  ;;  %v4055_v23 = vld [vmem:[%s6021_s1 + $0x1b4] ss:$8 sps:$4 sm:$0xff]  }
  0x2c   :  { %461 = vmatprep.subr.bf16.mxu0 %v4003_v24  ;;  %746 = vmatpush1.bf16.msra.mxu1 %v4096_v63  ;;  %v4053_v24 = vld [vmem:[%s6021_s1 + $0x1b0] ss:$8 sps:$4 sm:$0xff]  }
  0x2d   :  { %747 = vmatprep.subr.bf16.mxu1 %v4097_v0 }
  0x2f   :  { %462 = vmatpush1.bf16.msra.mxu0 %v4005_v25  ;;  %v4058_v25 = vld [vmem:[%s6021_s1 + $0x1c4] ss:$8 sps:$4 sm:$0xff]  }
  0x30   :  { %463 = vmatprep.subr.bf16.mxu0 %v4006_v26  ;;  %748 = vmatpush1.bf16.msra.mxu1 %v4099_v3  ;;  %v4056_v26 = vld [vmem:[%s6021_s1 + $0x1c0] ss:$8 sps:$4 sm:$0xff]  }
  0x31   :  { %749 = vmatprep.subr.bf16.mxu1 %v4100_v4 }
  0x33   :  { %464 = vmatpush1.bf16.msra.mxu0 %v4008_v30  ;;  %v4062_v30 = vld [vmem:[%s6021_s1 + $0x1e0] ss:$8 sps:$4 sm:$0xff]  }
  0x34   :  { %465 = vmatprep.subr.bf16.mxu0 %v4009_v32  ;;  %750 = vmatpush1.bf16.msra.mxu1 %v4102_v7  ;;  %v4065_v32 = vld [vmem:[%s6021_s1 + $0x1f0] ss:$8 sps:$4 sm:$0xff]  }
  0x35   :  { %751 = vmatprep.subr.bf16.mxu1 %v4103_v8 }
  0x37   :  { %466 = vmatpush1.bf16.msra.mxu0 %v4011_v34 }
  0x38   :  { %467 = vmatprep.subr.bf16.mxu0 %v4012_v36  ;;  %752 = vmatpush1.bf16.msra.mxu1 %v4105_v11 }
  0x39   :  { %753 = vmatprep.subr.bf16.mxu1 %v4106_v12 }
  0x3b   :  { %468 = vmatpush1.bf16.msra.mxu0 %v4014_v38 }
  0x3c   :  { %469 = vmatprep.subr.bf16.mxu0 %v4015_v40  ;;  %754 = vmatpush1.bf16.msra.mxu1 %v4108_v15 }
  0x3d   :  { %755 = vmatprep.subr.bf16.mxu1 %v4109_v16 }
  0x3f   :  { %470 = vmatpush1.bf16.msra.mxu0 %v4017_v42 }
  0x40   :  { %480 = vmatprep.subr.bf16.mxu0 %v4022_v43  ;;  %756 = vmatpush1.bf16.msra.mxu1 %v4111_v19 }
  0x42   :  { %472 = vmatmul.mubr.bf16.vlgmr.msra.gmra.mrb[0].mxu0 %v3249_v48 }
  0x43   :  { %481 = vmatpush1.bf16.msra.mxu0 %v4020_v47  ;;  %512 = vmatprep.mubr.bf16.mxu0 %v3252_v51 }
  0x44   :  { %482 = vmatprep.subr.bf16.mxu0 %v4025_v49 }
  0x47   :  { %483 = vmatpush1.bf16.msra.mxu0 %v4023_v53 }
  0x48   :  { %484 = vmatprep.subr.bf16.mxu0 %v4028_v54 }
  0x4b   :  { %485 = vmatpush1.bf16.msra.mxu0 %v4026_v57 }
  0x4c   :  { %486 = vmatprep.subr.bf16.mxu0 %v4031_v58 }
  0x4f   :  { %487 = vmatpush1.bf16.msra.mxu0 %v4029_v61 }
  0x50   :  { %488 = vmatprep.subr.bf16.mxu0 %v4034_v62 }
  0x53   :  { %489 = vmatpush1.bf16.msra.mxu0 %v4032_v1 }
  0x54   :  { %490 = vmatprep.subr.bf16.mxu0 %v4037_v2 }
  0x57   :  { %491 = vmatpush1.bf16.msra.mxu0 %v4035_v5 }
  0x58   :  { %492 = vmatprep.subr.bf16.mxu0 %v4040_v6 }
  0x5b   :  { %493 = vmatpush1.bf16.msra.mxu0 %v4038_v9 }
  0x5c   :  { %494 = vmatprep.subr.bf16.mxu0 %v4043_v10 }
  0x5f   :  { %495 = vmatpush1.bf16.msra.mxu0 %v4041_v13 }
  0x60   :  { %496 = vmatprep.subr.bf16.mxu0 %v4046_v14 }
  0x63   :  { %497 = vmatpush1.bf16.msra.mxu0 %v4044_v17 }
  0x64   :  { %498 = vmatprep.subr.bf16.mxu0 %v4049_v18 }
  0x67   :  { %499 = vmatpush1.bf16.msra.mxu0 %v4047_v20 }
  0x68   :  { %500 = vmatprep.subr.bf16.mxu0 %v4052_v21 }
  0x6b   :  { %501 = vmatpush1.bf16.msra.mxu0 %v4050_v22 }
  0x6c   :  { %502 = vmatprep.subr.bf16.mxu0 %v4055_v23 }
  0x6f   :  { %503 = vmatpush1.bf16.msra.mxu0 %v4053_v24 }
  0x70   :  { %504 = vmatprep.subr.bf16.mxu0 %v4058_v25 }
  0x73   :  { %505 = vmatpush1.bf16.msra.mxu0 %v4056_v26 }
  0x74   :  { %506 = vmatprep.subr.bf16.mxu0 %v4061_v27 }
  0x77   :  { %507 = vmatpush1.bf16.msra.mxu0 %v4059_v28 }
  0x78   :  { %508 = vmatprep.subr.bf16.mxu0 %v4064_v29 }
  0x7b   :  { %509 = vmatpush1.bf16.msra.mxu0 %v4062_v30 }
  0x7c   :  { %510 = vmatprep.subr.bf16.mxu0 %v4067_v31 }
  0x7f   :  { %511 = vmatpush1.bf16.msra.mxu0 %v4065_v32 }
  0x82   :  { %513 = vmatmul.mubr.bf16.vlgmr.msra.gmra.mrb[0].mxu0 %v3251_v33 }
  0x83   :  { %12 = vsyncpa [#allocation3], 0  ;;  %v4112_v34 = vld [vmem:[%s6023_s3 + $0xe4] ss:$8 sps:$4 sm:$0xff]   ;;  %v4114_v35 = vld [vmem:[%s6023_s3 + $0xe0] ss:$8 sps:$4 sm:$0xff]   ;;  %v95_v39 = vlaneseq }
  0x84   :  { %757 = vmatprep.subr.bf16.mxu1 %v4112_v34  ;;  %v4115_v36 = vld [vmem:[%s6023_s3 + $0xf4] ss:$8 sps:$4 sm:$0xff]   ;;  %v4117_v37 = vld [vmem:[%s6023_s3 + $0xf0] ss:$8 sps:$4 sm:$0xff]   ;;  %v4120_v38 = vld [vmem:[%s6023_s3 + $0x104] ss:$8 sps:$4 sm:$0xff]  }
  0x85   :  { %758 = vmatpush1.bf16.msra.mxu1 %v4114_v35  ;;  %v96_v40 = vshrl.u32 %v95_v39, 7  ;;  %v93_v42 = vld [vmem:[%s6022_s2] sm:$0x3]  ;;  %v4123_v57 = vld [vmem:[%s6023_s3 + $0x114] ss:$8 sps:$4 sm:$0xff]   ;;  %s4622_s30 = smov [#allocation2]  }
  0x86   :  { %759 = vmatprep.subr.bf16.mxu1 %v4115_v36  ;;  %v4118_v55 = vld [vmem:[%s6023_s3 + $0x100] ss:$8 sps:$4 sm:$0xff]   ;;  %v4121_v58 = vld [vmem:[%s6023_s3 + $0x110] ss:$8 sps:$4 sm:$0xff]   ;;  %v4126_v59 = vld [vmem:[%s6023_s3 + $0x124] ss:$8 sps:$4 sm:$0xff]  }
  0x87   :  { %v4972_v41 = vsub.s32 0, %v96_v40  ;;  %v4977_v43 = vsub.s32 1, %v96_v40  ;;  %v4124_v60 = vld [vmem:[%s6023_s3 + $0x120] ss:$8 sps:$4 sm:$0xff]   ;;  %v4129_v61 = vld [vmem:[%s6023_s3 + $0x134] ss:$8 sps:$4 sm:$0xff]  }
  0x88   :  { %v4127_v62 = vld [vmem:[%s6023_s3 + $0x130] ss:$8 sps:$4 sm:$0xff]   ;;  %v4132_v63 = vld [vmem:[%s6023_s3 + $0x144] ss:$8 sps:$4 sm:$0xff]   ;;  %v4130_v0 = vld [vmem:[%s6023_s3 + $0x140] ss:$8 sps:$4 sm:$0xff]  }
  0x89   :  { %760 = vmatpush1.bf16.msra.mxu1 %v4117_v37  ;;  %v98_v44 = vrot.slane %v93_v42, %v4972_v41  ;;  %v102_v45 = vrot.slane %v93_v42, %v4977_v43  ;;  %v4135_v1 = vld [vmem:[%s6023_s3 + $0x154] ss:$8 sps:$4 sm:$0xff]   ;;  %v4133_v2 = vld [vmem:[%s6023_s3 + $0x150] ss:$8 sps:$4 sm:$0xff]   ;;  %v4138_v3 = vld [vmem:[%s6023_s3 + $0x164] ss:$8 sps:$4 sm:$0xff]  }
  0x8a   :  { %980 = vmatprep.subr.bf16.mxu1 %v4120_v38  ;;  %v4136_v4 = vld [vmem:[%s6023_s3 + $0x160] ss:$8 sps:$4 sm:$0xff]   ;;  %v4141_v5 = vld [vmem:[%s6023_s3 + $0x174] ss:$8 sps:$4 sm:$0xff]   ;;  %v4139_v6 = vld [vmem:[%s6023_s3 + $0x170] ss:$8 sps:$4 sm:$0xff]  }
  0x8b   :  { %v4144_v7 = vld [vmem:[%s6023_s3 + $0x184] ss:$8 sps:$4 sm:$0xff]   ;;  %v4142_v8 = vld [vmem:[%s6023_s3 + $0x180] ss:$8 sps:$4 sm:$0xff]   ;;  %v4147_v9 = vld [vmem:[%s6023_s3 + $0x194] ss:$8 sps:$4 sm:$0xff]  }
  0x8c   :  { %v4145_v10 = vld [vmem:[%s6023_s3 + $0x190] ss:$8 sps:$4 sm:$0xff]   ;;  %v4150_v11 = vld [vmem:[%s6023_s3 + $0x1a4] ss:$8 sps:$4 sm:$0xff]   ;;  %v4148_v12 = vld [vmem:[%s6023_s3 + $0x1a0] ss:$8 sps:$4 sm:$0xff]  }
  0x8d   :  { %v4153_v13 = vld [vmem:[%s6023_s3 + $0x1b4] ss:$8 sps:$4 sm:$0xff]   ;;  %v4151_v14 = vld [vmem:[%s6023_s3 + $0x1b0] ss:$8 sps:$4 sm:$0xff]   ;;  %v4156_v15 = vld [vmem:[%s6023_s3 + $0x1c4] ss:$8 sps:$4 sm:$0xff]  }
  0x8e   :  { %v4154_v16 = vld [vmem:[%s6023_s3 + $0x1c0] ss:$8 sps:$4 sm:$0xff]   ;;  %v4159_v17 = vld [vmem:[%s6023_s3 + $0x1d4] ss:$8 sps:$4 sm:$0xff]   ;;  %v4157_v18 = vld [vmem:[%s6023_s3 + $0x1d0] ss:$8 sps:$4 sm:$0xff]  }
  0x8f   :  { %v4162_v19 = vld [vmem:[%s6023_s3 + $0x1e4] ss:$8 sps:$4 sm:$0xff]   ;;  %v4160_v20 = vld [vmem:[%s6023_s3 + $0x1e0] ss:$8 sps:$4 sm:$0xff]   ;;  %v4165_v21 = vld [vmem:[%s6023_s3 + $0x1f4] ss:$8 sps:$4 sm:$0xff]  }
  0x90   :  { %v4163_v22 = vld [vmem:[%s6023_s3 + $0x1f0] ss:$8 sps:$4 sm:$0xff]   ;;  %v4166_v23 = vld [vmem:[%s6023_s3 + $0x200] ss:$8 sps:$4 sm:$0xff]   ;;  %v4168_v24 = vld [vmem:[%s6023_s3 + $0x204] ss:$8 sps:$4 sm:$0xff]  }
  0x91   :  { %v4171_v25 = vld [vmem:[%s6023_s3 + $0x214] ss:$8 sps:$4 sm:$0xff]   ;;  %1231 = vmatprep.subr.bf16.mxu0 %v4168_v24  ;;  %v4169_v26 = vld [vmem:[%s6023_s3 + $0x210] ss:$8 sps:$4 sm:$0xff]   ;;  %v4174_v27 = vld [vmem:[%s6023_s3 + $0x224] ss:$8 sps:$4 sm:$0xff]  }
  0x92   :  { %1232 = vmatpush1.bf16.msra.mxu0 %v4166_v23  ;;  %v4172_v28 = vld [vmem:[%s6023_s3 + $0x220] ss:$8 sps:$4 sm:$0xff]   ;;  %v4177_v29 = vld [vmem:[%s6023_s3 + $0x234] ss:$8 sps:$4 sm:$0xff]   ;;  %v4175_v30 = vld [vmem:[%s6023_s3 + $0x230] ss:$8 sps:$4 sm:$0xff]  }
  0x93   :  { %1233 = vmatprep.subr.bf16.mxu0 %v4171_v25  ;;  %v4180_v31 = vld [vmem:[%s6023_s3 + $0x244] ss:$8 sps:$4 sm:$0xff]   ;;  %v4178_v32 = vld [vmem:[%s6023_s3 + $0x240] ss:$8 sps:$4 sm:$0xff]   ;;  %v4183_v33 = vld [vmem:[%s6023_s3 + $0x254] ss:$8 sps:$4 sm:$0xff]  }
  0x94   :  { %v4181_v34 = vld [vmem:[%s6023_s3 + $0x250] ss:$8 sps:$4 sm:$0xff]   ;;  %v4186_v35 = vld [vmem:[%s6023_s3 + $0x264] ss:$8 sps:$4 sm:$0xff]   ;;  %v4184_v36 = vld [vmem:[%s6023_s3 + $0x260] ss:$8 sps:$4 sm:$0xff]  }
  0x95   :  { %v4189_v37 = vld [vmem:[%s6023_s3 + $0x274] ss:$8 sps:$4 sm:$0xff]   ;;  %v4187_v38 = vld [vmem:[%s6023_s3 + $0x270] ss:$8 sps:$4 sm:$0xff]   ;;  %v4192_v39 = vld [vmem:[%s6023_s3 + $0x284] ss:$8 sps:$4 sm:$0xff]  }
  0x96   :  { %1234 = vmatpush1.bf16.msra.mxu0 %v4169_v26  ;;  %v4190_v40 = vld [vmem:[%s6023_s3 + $0x280] ss:$8 sps:$4 sm:$0xff]   ;;  %v4195_v42 = vld [vmem:[%s6023_s3 + $0x294] ss:$8 sps:$4 sm:$0xff]   ;;  %v4241_v25 = vld [vmem:[%s6023_s3 + $0x390] ss:$8 sps:$4 sm:$0xff]  }
  0x97   :  { %1235 = vmatprep.subr.bf16.mxu0 %v4174_v27  ;;  %v4238_v23 = vld [vmem:[%s6023_s3 + $0x380] ss:$8 sps:$4 sm:$0xff]   ;;  %v4243_v24 = vld [vmem:[%s6023_s3 + $0x394] ss:$8 sps:$4 sm:$0xff]   ;;  %v4246_v26 = vld [vmem:[%s6023_s3 + $0x3a4] ss:$8 sps:$4 sm:$0xff]  }
  0x98   :  { %v4244_v27 = vld [vmem:[%s6023_s3 + $0x3a0] ss:$8 sps:$4 sm:$0xff]   ;;  %s3241_s8 = sshll.u32 %s4622_s30, 4  ;;  %s3242_s8 = int_to_ptr.vmem [resolvable:$true] %s3241_s8 }
  0x99   :  { %s4598_s9 = scalar_lea.vmem %s3242_s8, 256  ;;  %p4603_p1 = scmp.lt.s32.totalorder %s3242_s8, %s3242_s8 }
  0x9a   :  { %1236 = vmatpush1.bf16.msra.mxu0 %v4172_v28  ;;  %v4249_v28 = vld [vmem:[%s6023_s3 + $0x3b4] ss:$8 sps:$4 sm:$0xff]   ;;  %p4599_p0 = scmp.ne.s32.totalorder %s3242_s8, %s4598_s9  ;;  %p4604_p2 = scmp.lt.s32.totalorder %s4598_s9, %s4598_s9 }
  0x9b   :  { %1237 = vmatprep.subr.bf16.mxu0 %v4177_v29  ;;  %v4247_v29 = vld [vmem:[%s6023_s3 + $0x3b0] ss:$8 sps:$4 sm:$0xff]  }
  0x9c   :  { %p4605_p3 = por %p4604_p2, %p4603_p1 }
  0x9e   :  { %1238 = vmatpush1.bf16.msra.mxu0 %v4175_v30  ;;  %v4252_v30 = vld [vmem:[%s6023_s3 + $0x3c4] ss:$8 sps:$4 sm:$0xff]   ;;  %p4606_p4 = pnand %p4605_p3, %p4599_p0 }
  0x9f   :  { %1239 = vmatprep.subr.bf16.mxu0 %v4180_v31  ;;  %v4250_v31 = vld [vmem:[%s6023_s3 + $0x3c0] ss:$8 sps:$4 sm:$0xff]  }
  0xa2   :  { %1240 = vmatpush1.bf16.msra.mxu0 %v4178_v32  ;;  %v4255_v32 = vld [vmem:[%s6023_s3 + $0x3d4] ss:$8 sps:$4 sm:$0xff]  }
  0xa3   :  { %1241 = vmatprep.subr.bf16.mxu0 %v4183_v33  ;;  %v4253_v33 = vld [vmem:[%s6023_s3 + $0x3d0] ss:$8 sps:$4 sm:$0xff]  }
  0xa6   :  { %1242 = vmatpush1.bf16.msra.mxu0 %v4181_v34  ;;  %v3381_v34 = vld [vmem:[%s6024_s4 + $0x2] sm:$0x3] }
  0xa7   :  { %1243 = vmatprep.subr.bf16.mxu0 %v4186_v35  ;;  %v813_v35 = vrot.slane %v3381_v34, %v4972_v41 }
  0xaa   :  { %1244 = vmatpush1.bf16.msra.mxu0 %v4184_v36  ;;  %v817_v36 = vrot.slane %v3381_v34, %v4977_v43  ;;  %v4309_v34 = vld [vmem:[%s6023_s3 + $0x4f4] ss:$8 sps:$4 sm:$0xff]  }
  0xab   :  { %1245 = vmatprep.subr.bf16.mxu0 %v4189_v37 }
  0xae   :  { %1246 = vmatpush1.bf16.msra.mxu0 %v4187_v38 }
  0xaf   :  { %1247 = vmatprep.subr.bf16.mxu0 %v4192_v39 }
  0xb2   :  { %1248 = vmatpush1.bf16.msra.mxu0 %v4190_v40 }
  0xb3   :  { %1249 = vmatprep.subr.bf16.mxu0 %v4195_v42 }
 0x155   :  { %v514_v46 = vpop.f32.mrb[0].mxu0 }
 0x156   :  { %v3963_v47 = vadd.f32 %v514_v46, %v98_v44  ;;  %v516_v48 = vpop.f32.mrb[1].mxu0  ;;  %v4193_v44 = vld [vmem:[%s6023_s3 + $0x290] ss:$8 sps:$4 sm:$0xff]   ;;  %v4196_v46 = vld [vmem:[%s6023_s3 + $0x2a0] ss:$8 sps:$4 sm:$0xff]  }
 0x157   :  { %v3964_v49 = vadd.f32 %v516_v48, %v102_v45  ;;  %v518_v50 = vpop.f32.mrb[2].mxu0  ;;  %v4198_v45 = vld [vmem:[%s6023_s3 + $0x2a4] ss:$8 sps:$4 sm:$0xff]   ;;  %1250 = vmatpush1.bf16.msra.mxu0 %v4193_v44  ;;  %v4199_v48 = vld [vmem:[%s6023_s3 + $0x2b0] ss:$8 sps:$4 sm:$0xff]  }
 0x158   :  { %v521_v51 = vmax.f32 %v3963_v47, 0.0  ;;  %v519_v52 = vpop.f32.mrb[3].mxu0  ;;  %1251 = vmatprep.subr.bf16.mxu0 %v4198_v45  ;;  %v4201_v47 = vld [vmem:[%s6023_s3 + $0x2b4] ss:$8 sps:$4 sm:$0xff]   ;;  %v4202_v50 = vld [vmem:[%s6023_s3 + $0x2c0] ss:$8 sps:$4 sm:$0xff]  }
 0x159   :  { %v522_v53 = vmax.f32 %v3964_v49, 0.0  ;;  %v4204_v49 = vld [vmem:[%s6023_s3 + $0x2c4] ss:$8 sps:$4 sm:$0xff]   ;;  %v4205_v52 = vld [vmem:[%s6023_s3 + $0x2d0] ss:$8 sps:$4 sm:$0xff]  }
 0x15a   :  { %v523_v56 = vpack.c.bf16 %v521_v51, %v521_v51  ;;  %v4207_v51 = vld [vmem:[%s6023_s3 + $0x2d4] ss:$8 sps:$4 sm:$0xff]  }
 0x15b   :  { %v524_v54 = vpack.c.bf16 %v522_v53, %v522_v53  ;;  %1252 = vmatpush1.bf16.msra.mxu0 %v4196_v46  ;;  %v557_v53 = vld [vmem:[%s6024_s4] sm:$0x3] }
 0x15c   :  { %1253 = vmatprep.subr.bf16.mxu0 %v4201_v47 }
 0x15d   :  { %761 = vmatprep.mubr.bf16.mxu1 %v524_v54  ;;  %v562_v54 = vrot.slane %v557_v53, %v4972_v41 }
 0x15e   :  { %762 = vmatmul.mubr.bf16.vlgmr.msra.gmra.mrb[0].mxu1 %v523_v56 }
 0x15f   :  { %981 = vmatpush1.bf16.msra.mxu1 %v4118_v55  ;;  %1254 = vmatpush1.bf16.msra.mxu0 %v4199_v48  ;;  %v566_v55 = vrot.slane %v557_v53, %v4977_v43  ;;  %v4262_v53 = vld [vmem:[%s6023_s3 + $0x400] ss:$8 sps:$4 sm:$0xff]  }
 0x160   :  { %982 = vmatprep.subr.bf16.mxu1 %v4123_v57  ;;  %1255 = vmatprep.subr.bf16.mxu0 %v4204_v49  ;;  %v4258_v49 = vld [vmem:[%s6023_s3 + $0x3e4] ss:$8 sps:$4 sm:$0xff]  }
 0x163   :  { %983 = vmatpush1.bf16.msra.mxu1 %v4121_v58  ;;  %1256 = vmatpush1.bf16.msra.mxu0 %v4202_v50  ;;  %v4256_v50 = vld [vmem:[%s6023_s3 + $0x3e0] ss:$8 sps:$4 sm:$0xff]  }
 0x164   :  { %984 = vmatprep.subr.bf16.mxu1 %v4126_v59  ;;  %1257 = vmatprep.subr.bf16.mxu0 %v4207_v51  ;;  %v4261_v51 = vld [vmem:[%s6023_s3 + $0x3f4] ss:$8 sps:$4 sm:$0xff]  }
 0x167   :  { %985 = vmatpush1.bf16.msra.mxu1 %v4124_v60  ;;  %1258 = vmatpush1.bf16.msra.mxu0 %v4205_v52  ;;  %v4259_v52 = vld [vmem:[%s6023_s3 + $0x3f0] ss:$8 sps:$4 sm:$0xff]  }
 0x168   :  { %986 = vmatprep.subr.bf16.mxu1 %v4129_v61 }
 0x16b   :  { %987 = vmatpush1.bf16.msra.mxu1 %v4127_v62 }
 0x16c   :  { %988 = vmatprep.subr.bf16.mxu1 %v4132_v63 }
 0x16f   :  { %989 = vmatpush1.bf16.msra.mxu1 %v4130_v0 }
 0x170   :  { %990 = vmatprep.subr.bf16.mxu1 %v4135_v1 }
 0x173   :  { %991 = vmatpush1.bf16.msra.mxu1 %v4133_v2  ;;  %v4210_v2 = vld [vmem:[%s6023_s3 + $0x2e4] ss:$8 sps:$4 sm:$0xff]  }
 0x174   :  { %992 = vmatprep.subr.bf16.mxu1 %v4138_v3  ;;  %v4208_v3 = vld [vmem:[%s6023_s3 + $0x2e0] ss:$8 sps:$4 sm:$0xff]   ;;  %1259 = vmatprep.subr.bf16.mxu0 %v4210_v2  ;;  %v4277_v2 = vld [vmem:[%s6023_s3 + $0x450] ss:$8 sps:$4 sm:$0xff]  }
 0x175   :  { %1260 = vmatpush1.bf16.msra.mxu0 %v4208_v3  ;;  %v4282_v3 = vld [vmem:[%s6023_s3 + $0x464] ss:$8 sps:$4 sm:$0xff]  }
 0x177   :  { %993 = vmatpush1.bf16.msra.mxu1 %v4136_v4  ;;  %v4213_v4 = vld [vmem:[%s6023_s3 + $0x2f4] ss:$8 sps:$4 sm:$0xff]  }
 0x178   :  { %994 = vmatprep.subr.bf16.mxu1 %v4141_v5  ;;  %v4211_v5 = vld [vmem:[%s6023_s3 + $0x2f0] ss:$8 sps:$4 sm:$0xff]   ;;  %1261 = vmatprep.subr.bf16.mxu0 %v4213_v4  ;;  %v4280_v4 = vld [vmem:[%s6023_s3 + $0x460] ss:$8 sps:$4 sm:$0xff]  }
 0x179   :  { %1262 = vmatpush1.bf16.msra.mxu0 %v4211_v5  ;;  %v4285_v5 = vld [vmem:[%s6023_s3 + $0x474] ss:$8 sps:$4 sm:$0xff]  }
 0x17b   :  { %995 = vmatpush1.bf16.msra.mxu1 %v4139_v6  ;;  %v4214_v6 = vld [vmem:[%s6023_s3 + $0x300] ss:$8 sps:$4 sm:$0xff]  }
 0x17c   :  { %996 = vmatprep.subr.bf16.mxu1 %v4144_v7  ;;  %v4216_v7 = vld [vmem:[%s6023_s3 + $0x304] ss:$8 sps:$4 sm:$0xff]  }
 0x17f   :  { %997 = vmatpush1.bf16.msra.mxu1 %v4142_v8  ;;  %v4219_v8 = vld [vmem:[%s6023_s3 + $0x314] ss:$8 sps:$4 sm:$0xff]  }
 0x180   :  { %998 = vmatprep.subr.bf16.mxu1 %v4147_v9  ;;  %v4217_v9 = vld [vmem:[%s6023_s3 + $0x310] ss:$8 sps:$4 sm:$0xff]  }
 0x183   :  { %999 = vmatpush1.bf16.msra.mxu1 %v4145_v10  ;;  %v4222_v10 = vld [vmem:[%s6023_s3 + $0x324] ss:$8 sps:$4 sm:$0xff]  }
 0x184   :  { %1000 = vmatprep.subr.bf16.mxu1 %v4150_v11  ;;  %v4220_v11 = vld [vmem:[%s6023_s3 + $0x320] ss:$8 sps:$4 sm:$0xff]  }
 0x187   :  { %1001 = vmatpush1.bf16.msra.mxu1 %v4148_v12  ;;  %v4225_v12 = vld [vmem:[%s6023_s3 + $0x334] ss:$8 sps:$4 sm:$0xff]  }
 0x188   :  { %1002 = vmatprep.subr.bf16.mxu1 %v4153_v13  ;;  %v4223_v13 = vld [vmem:[%s6023_s3 + $0x330] ss:$8 sps:$4 sm:$0xff]  }
 0x18b   :  { %1003 = vmatpush1.bf16.msra.mxu1 %v4151_v14  ;;  %v4228_v14 = vld [vmem:[%s6023_s3 + $0x344] ss:$8 sps:$4 sm:$0xff]  }
 0x18c   :  { %1004 = vmatprep.subr.bf16.mxu1 %v4156_v15  ;;  %v4226_v15 = vld [vmem:[%s6023_s3 + $0x340] ss:$8 sps:$4 sm:$0xff]  }
 0x18f   :  { %1005 = vmatpush1.bf16.msra.mxu1 %v4154_v16  ;;  %v4231_v16 = vld [vmem:[%s6023_s3 + $0x354] ss:$8 sps:$4 sm:$0xff]  }
 0x190   :  { %1006 = vmatprep.subr.bf16.mxu1 %v4159_v17  ;;  %v4229_v17 = vld [vmem:[%s6023_s3 + $0x350] ss:$8 sps:$4 sm:$0xff]  }
 0x193   :  { %1007 = vmatpush1.bf16.msra.mxu1 %v4157_v18  ;;  %v4234_v18 = vld [vmem:[%s6023_s3 + $0x364] ss:$8 sps:$4 sm:$0xff]  }
 0x194   :  { %1008 = vmatprep.subr.bf16.mxu1 %v4162_v19  ;;  %v4232_v19 = vld [vmem:[%s6023_s3 + $0x360] ss:$8 sps:$4 sm:$0xff]  }
 0x197   :  { %1009 = vmatpush1.bf16.msra.mxu1 %v4160_v20  ;;  %v4237_v20 = vld [vmem:[%s6023_s3 + $0x374] ss:$8 sps:$4 sm:$0xff]  }
 0x198   :  { %1010 = vmatprep.subr.bf16.mxu1 %v4165_v21  ;;  %v4235_v21 = vld [vmem:[%s6023_s3 + $0x370] ss:$8 sps:$4 sm:$0xff]  }
 0x19b   :  { %1011 = vmatpush1.bf16.msra.mxu1 %v4163_v22  ;;  %v4240_v22 = vld [vmem:[%s6023_s3 + $0x384] ss:$8 sps:$4 sm:$0xff]  }
 0x19c   :  { %1482 = vmatprep.subr.bf16.mxu1 %v4216_v7  ;;  %v4288_v7 = vld [vmem:[%s6023_s3 + $0x484] ss:$8 sps:$4 sm:$0xff]  }
 0x231   :  { %v763_v56 = vpop.f32.mrb[0].mxu1 }
 0x232   :  { %v764_v57 = vadd.f32 %v763_v56, %v562_v54  ;;  %v765_v58 = vpop.f32.mrb[1].mxu1  ;;  %v4264_v54 = vld [vmem:[%s6023_s3 + $0x404] ss:$8 sps:$4 sm:$0xff]   ;;  %v4265_v56 = vld [vmem:[%s6023_s3 + $0x410] ss:$8 sps:$4 sm:$0xff]  }
 0x233   :  { %v766_v59 = vadd.f32 %v765_v58, %v566_v55  ;;  %v767_v60 = vpop.f32.mrb[2].mxu1  ;;  %v4267_v55 = vld [vmem:[%s6023_s3 + $0x414] ss:$8 sps:$4 sm:$0xff]   ;;  %1733 = vmatprep.subr.bf16.mxu0 %v4264_v54  ;;  %v4268_v58 = vld [vmem:[%s6023_s3 + $0x420] ss:$8 sps:$4 sm:$0xff]  }
 0x234   :  { %v770_v61 = vmax.f32 %v764_v57, 0.0  ;;  %v768_v62 = vpop.f32.mrb[3].mxu1  ;;  %v4270_v57 = vld [vmem:[%s6023_s3 + $0x424] ss:$8 sps:$4 sm:$0xff]   ;;  %v4271_v60 = vld [vmem:[%s6023_s3 + $0x430] ss:$8 sps:$4 sm:$0xff]  }
 0x235   :  { %v771_v63 = vmax.f32 %v766_v59, 0.0  ;;  %v4273_v59 = vld [vmem:[%s6023_s3 + $0x434] ss:$8 sps:$4 sm:$0xff]   ;;  %v4274_v62 = vld [vmem:[%s6023_s3 + $0x440] ss:$8 sps:$4 sm:$0xff]  }
 0x236   :  { %v5165_v1 = vpack.c.bf16 %v770_v61, %v770_v61  ;;  %v4276_v61 = vld [vmem:[%s6023_s3 + $0x444] ss:$8 sps:$4 sm:$0xff]  }
 0x237   :  { %v5163_v0 = vpack.c.bf16 %v771_v63, %v771_v63  ;;  %v4279_v63 = vld [vmem:[%s6023_s3 + $0x454] ss:$8 sps:$4 sm:$0xff]   ;;  %v4336_v54 = vld [vmem:[%s6023_s3 + $0x584] ss:$8 sps:$4 sm:$0xff]  }
 0x239   :  { %1012 = vmatprep.mubr.bf16.mxu1 %v5163_v0 }
 0x23a   :  { %1013 = vmatmul.mubr.bf16.vlgmr.msra.gmra.mrb[4].mxu1 %v5165_v1 }
 0x23b   :  { %1483 = vmatpush1.bf16.msra.mxu1 %v4214_v6  ;;  %v4283_v6 = vld [vmem:[%s6023_s3 + $0x470] ss:$8 sps:$4 sm:$0xff]  }
 0x23c   :  { %1484 = vmatprep.subr.bf16.mxu1 %v4219_v8  ;;  %v4286_v8 = vld [vmem:[%s6023_s3 + $0x480] ss:$8 sps:$4 sm:$0xff]  }
 0x23f   :  { %1485 = vmatpush1.bf16.msra.mxu1 %v4217_v9  ;;  %v4291_v9 = vld [vmem:[%s6023_s3 + $0x494] ss:$8 sps:$4 sm:$0xff]  }
 0x240   :  { %1486 = vmatprep.subr.bf16.mxu1 %v4222_v10  ;;  %v4289_v10 = vld [vmem:[%s6023_s3 + $0x490] ss:$8 sps:$4 sm:$0xff]  }
 0x243   :  { %1487 = vmatpush1.bf16.msra.mxu1 %v4220_v11  ;;  %v4294_v11 = vld [vmem:[%s6023_s3 + $0x4a4] ss:$8 sps:$4 sm:$0xff]  }
 0x244   :  { %1488 = vmatprep.subr.bf16.mxu1 %v4225_v12  ;;  %v4292_v12 = vld [vmem:[%s6023_s3 + $0x4a0] ss:$8 sps:$4 sm:$0xff]  }
 0x247   :  { %1489 = vmatpush1.bf16.msra.mxu1 %v4223_v13  ;;  %v4297_v13 = vld [vmem:[%s6023_s3 + $0x4b4] ss:$8 sps:$4 sm:$0xff]  }
 0x248   :  { %1490 = vmatprep.subr.bf16.mxu1 %v4228_v14  ;;  %v4295_v14 = vld [vmem:[%s6023_s3 + $0x4b0] ss:$8 sps:$4 sm:$0xff]  }
 0x24b   :  { %1491 = vmatpush1.bf16.msra.mxu1 %v4226_v15  ;;  %v4300_v15 = vld [vmem:[%s6023_s3 + $0x4c4] ss:$8 sps:$4 sm:$0xff]  }
 0x24c   :  { %1492 = vmatprep.subr.bf16.mxu1 %v4231_v16  ;;  %v4298_v16 = vld [vmem:[%s6023_s3 + $0x4c0] ss:$8 sps:$4 sm:$0xff]  }
 0x24f   :  { %1493 = vmatpush1.bf16.msra.mxu1 %v4229_v17  ;;  %v4303_v17 = vld [vmem:[%s6023_s3 + $0x4d4] ss:$8 sps:$4 sm:$0xff]  }
 0x250   :  { %1494 = vmatprep.subr.bf16.mxu1 %v4234_v18  ;;  %v4301_v18 = vld [vmem:[%s6023_s3 + $0x4d0] ss:$8 sps:$4 sm:$0xff]  }
 0x253   :  { %1495 = vmatpush1.bf16.msra.mxu1 %v4232_v19  ;;  %v3446_v19 = vld [vmem:[%s6024_s4 + $0x4] sm:$0x3] }
 0x254   :  { %1496 = vmatprep.subr.bf16.mxu1 %v4237_v20  ;;  %v1064_v20 = vrot.slane %v3446_v19, %v4972_v41 }
 0x257   :  { %1497 = vmatpush1.bf16.msra.mxu1 %v4235_v21  ;;  %v1068_v21 = vrot.slane %v3446_v19, %v4977_v43  ;;  %v4357_v19 = vld [vmem:[%s6023_s3 + $0x5f4] ss:$8 sps:$4 sm:$0xff]  }
 0x258   :  { %1498 = vmatprep.subr.bf16.mxu1 %v4240_v22 }
 0x25b   :  { %1499 = vmatpush1.bf16.msra.mxu1 %v4238_v23 }
 0x25c   :  { %1500 = vmatprep.subr.bf16.mxu1 %v4243_v24 }
 0x25f   :  { %1501 = vmatpush1.bf16.msra.mxu1 %v4241_v25 }
 0x260   :  { %1502 = vmatprep.subr.bf16.mxu1 %v4246_v26 }
 0x263   :  { %1503 = vmatpush1.bf16.msra.mxu1 %v4244_v27 }
 0x264   :  { %1504 = vmatprep.subr.bf16.mxu1 %v4249_v28 }
 0x267   :  { %1505 = vmatpush1.bf16.msra.mxu1 %v4247_v29 }
 0x268   :  { %1506 = vmatprep.subr.bf16.mxu1 %v4252_v30 }
 0x26b   :  { %1507 = vmatpush1.bf16.msra.mxu1 %v4250_v31 }
 0x26c   :  { %1508 = vmatprep.subr.bf16.mxu1 %v4255_v32  ;;  %v4306_v32 = vld [vmem:[%s6023_s3 + $0x4e4] ss:$8 sps:$4 sm:$0xff]  }
 0x26f   :  { %1509 = vmatpush1.bf16.msra.mxu1 %v4253_v33  ;;  %v4304_v33 = vld [vmem:[%s6023_s3 + $0x4e0] ss:$8 sps:$4 sm:$0xff]  }
 0x270   :  { %1510 = vmatprep.subr.bf16.mxu1 %v4258_v49  ;;  %v4325_v49 = vld [vmem:[%s6023_s3 + $0x550] ss:$8 sps:$4 sm:$0xff]  }
 0x273   :  { %1511 = vmatpush1.bf16.msra.mxu1 %v4256_v50  ;;  %v4330_v50 = vld [vmem:[%s6023_s3 + $0x564] ss:$8 sps:$4 sm:$0xff]  }
 0x274   :  { %1512 = vmatprep.subr.bf16.mxu1 %v4261_v51  ;;  %v4328_v51 = vld [vmem:[%s6023_s3 + $0x560] ss:$8 sps:$4 sm:$0xff]  }
 0x277   :  { %1513 = vmatpush1.bf16.msra.mxu1 %v4259_v52  ;;  %v4333_v52 = vld [vmem:[%s6023_s3 + $0x574] ss:$8 sps:$4 sm:$0xff]  }
 0x30d   :  { %v1014_v37 = vpop.f32.mrb[4].mxu1 }
 0x30e   :  { %v1015_v38 = vadd.f32 %v1014_v37, %v813_v35  ;;  %v1016_v39 = vpop.f32.mrb[5].mxu1  ;;  %v4307_v35 = vld [vmem:[%s6023_s3 + $0x4f0] ss:$8 sps:$4 sm:$0xff]   ;;  %v4312_v37 = vld [vmem:[%s6023_s3 + $0x504] ss:$8 sps:$4 sm:$0xff]  }
 0x30f   :  { %v1017_v40 = vadd.f32 %v1016_v39, %v817_v36  ;;  %v1018_v42 = vpop.f32.mrb[6].mxu1  ;;  %v4310_v36 = vld [vmem:[%s6023_s3 + $0x500] ss:$8 sps:$4 sm:$0xff]   ;;  %1984 = vmatprep.subr.bf16.mxu1 %v4312_v37  ;;  %v4313_v39 = vld [vmem:[%s6023_s3 + $0x510] ss:$8 sps:$4 sm:$0xff]  }
 0x310   :  { %v1021_v44 = vmax.f32 %v1015_v38, 0.0  ;;  %v1019_v45 = vpop.f32.mrb[7].mxu1  ;;  %v4315_v38 = vld [vmem:[%s6023_s3 + $0x514] ss:$8 sps:$4 sm:$0xff]   ;;  %v4316_v42 = vld [vmem:[%s6023_s3 + $0x520] ss:$8 sps:$4 sm:$0xff]  }
 0x311   :  { %v1022_v46 = vmax.f32 %v1017_v40, 0.0  ;;  %v4318_v40 = vld [vmem:[%s6023_s3 + $0x524] ss:$8 sps:$4 sm:$0xff]   ;;  %v4319_v45 = vld [vmem:[%s6023_s3 + $0x530] ss:$8 sps:$4 sm:$0xff]  }
 0x312   :  { %v1023_v48 = vpack.c.bf16 %v1021_v44, %v1021_v44  ;;  %v4321_v44 = vld [vmem:[%s6023_s3 + $0x534] ss:$8 sps:$4 sm:$0xff]  }
 0x313   :  { %v1024_v47 = vpack.c.bf16 %v1022_v46, %v1022_v46  ;;  %v4324_v46 = vld [vmem:[%s6023_s3 + $0x544] ss:$8 sps:$4 sm:$0xff]  }
 0x315   :  { %1263 = vmatprep.mubr.bf16.mxu0 %v1024_v47  ;;  %v4322_v47 = vld [vmem:[%s6023_s3 + $0x540] ss:$8 sps:$4 sm:$0xff]  }
 0x316   :  { %1264 = vmatmul.mubr.bf16.vlgmr.msra.gmra.mrb[4].mxu0 %v1023_v48  ;;  %v4327_v48 = vld [vmem:[%s6023_s3 + $0x554] ss:$8 sps:$4 sm:$0xff]  }
 0x317   :  { %1734 = vmatpush1.bf16.msra.mxu0 %v4262_v53  ;;  %v4331_v53 = vld [vmem:[%s6023_s3 + $0x570] ss:$8 sps:$4 sm:$0xff]  }
 0x318   :  { %1735 = vmatprep.subr.bf16.mxu0 %v4267_v55  ;;  %v4334_v55 = vld [vmem:[%s6023_s3 + $0x580] ss:$8 sps:$4 sm:$0xff]  }
 0x31b   :  { %1736 = vmatpush1.bf16.msra.mxu0 %v4265_v56  ;;  %v4339_v56 = vld [vmem:[%s6023_s3 + $0x594] ss:$8 sps:$4 sm:$0xff]  }
 0x31c   :  { %1737 = vmatprep.subr.bf16.mxu0 %v4270_v57  ;;  %v4337_v57 = vld [vmem:[%s6023_s3 + $0x590] ss:$8 sps:$4 sm:$0xff]  }
 0x31f   :  { %1738 = vmatpush1.bf16.msra.mxu0 %v4268_v58  ;;  %v4342_v58 = vld [vmem:[%s6023_s3 + $0x5a4] ss:$8 sps:$4 sm:$0xff]  }
 0x320   :  { %1739 = vmatprep.subr.bf16.mxu0 %v4273_v59  ;;  %v4340_v59 = vld [vmem:[%s6023_s3 + $0x5a0] ss:$8 sps:$4 sm:$0xff]  }
 0x323   :  { %1740 = vmatpush1.bf16.msra.mxu0 %v4271_v60  ;;  %v4345_v60 = vld [vmem:[%s6023_s3 + $0x5b4] ss:$8 sps:$4 sm:$0xff]  }
 0x324   :  { %1741 = vmatprep.subr.bf16.mxu0 %v4276_v61  ;;  %v4343_v61 = vld [vmem:[%s6023_s3 + $0x5b0] ss:$8 sps:$4 sm:$0xff]  }
 0x327   :  { %1742 = vmatpush1.bf16.msra.mxu0 %v4274_v62  ;;  %v4348_v62 = vld [vmem:[%s6023_s3 + $0x5c4] ss:$8 sps:$4 sm:$0xff]  }
 0x328   :  { %1743 = vmatprep.subr.bf16.mxu0 %v4279_v63  ;;  %v4346_v63 = vld [vmem:[%s6023_s3 + $0x5c0] ss:$8 sps:$4 sm:$0xff]  }
 0x32b   :  { %1744 = vmatpush1.bf16.msra.mxu0 %v4277_v2  ;;  %v4351_v2 = vld [vmem:[%s6023_s3 + $0x5d4] ss:$8 sps:$4 sm:$0xff]  }
 0x32c   :  { %1745 = vmatprep.subr.bf16.mxu0 %v4282_v3  ;;  %v4349_v3 = vld [vmem:[%s6023_s3 + $0x5d0] ss:$8 sps:$4 sm:$0xff]  }
 0x32f   :  { %1746 = vmatpush1.bf16.msra.mxu0 %v4280_v4  ;;  %v3511_v4 = vld [vmem:[%s6024_s4 + $0x6] sm:$0x3] }
 0x330   :  { %1747 = vmatprep.subr.bf16.mxu0 %v4285_v5  ;;  %v1315_v5 = vrot.slane %v3511_v4, %v4972_v41 }
 0x333   :  { %1748 = vmatpush1.bf16.msra.mxu0 %v4283_v6  ;;  %v1319_v6 = vrot.slane %v3511_v4, %v4977_v43  ;;  %v4477_v4 = vld [vmem:[%s6023_s3 + $0x674] ss:$8 sps:$4 sm:$0xff]  }
 0x334   :  { %1749 = vmatprep.subr.bf16.mxu0 %v4288_v7 }
 0x337   :  { %1750 = vmatpush1.bf16.msra.mxu0 %v4286_v8 }
 0x338   :  { %1751 = vmatprep.subr.bf16.mxu0 %v4291_v9 }
 0x33b   :  { %1752 = vmatpush1.bf16.msra.mxu0 %v4289_v10 }
 0x33c   :  { %1753 = vmatprep.subr.bf16.mxu0 %v4294_v11 }
 0x33f   :  { %1754 = vmatpush1.bf16.msra.mxu0 %v4292_v12 }
 0x340   :  { %1755 = vmatprep.subr.bf16.mxu0 %v4297_v13 }
 0x343   :  { %1756 = vmatpush1.bf16.msra.mxu0 %v4295_v14 }
 0x344   :  { %1757 = vmatprep.subr.bf16.mxu0 %v4300_v15 }
 0x347   :  { %1758 = vmatpush1.bf16.msra.mxu0 %v4298_v16 }
 0x348   :  { %1759 = vmatprep.subr.bf16.mxu0 %v4303_v17  ;;  %v4354_v17 = vld [vmem:[%s6023_s3 + $0x5e4] ss:$8 sps:$4 sm:$0xff]  }
 0x34b   :  { %1760 = vmatpush1.bf16.msra.mxu0 %v4301_v18  ;;  %v4352_v18 = vld [vmem:[%s6023_s3 + $0x5e0] ss:$8 sps:$4 sm:$0xff]  }
 0x34c   :  { %1761 = vmatprep.subr.bf16.mxu0 %v4306_v32 }
 0x34f   :  { %1762 = vmatpush1.bf16.msra.mxu0 %v4304_v33 }
 0x350   :  { %1763 = vmatprep.subr.bf16.mxu0 %v4309_v34 }
 0x353   :  { %1764 = vmatpush1.bf16.msra.mxu0 %v4307_v35 }
 0x3e9   :  { %v1265_v22 = vpop.f32.mrb[4].mxu0 }
 0x3ea   :  { %v1266_v23 = vadd.f32 %v1265_v22, %v1064_v20  ;;  %v1267_v24 = vpop.f32.mrb[5].mxu0  ;;  %v4355_v20 = vld [vmem:[%s6023_s3 + $0x5f0] ss:$8 sps:$4 sm:$0xff]   ;;  %v3576_v22 = vld [vmem:[%s6024_s4 + $0x8] sm:$0x3] }
 0x3eb   :  { %v1268_v25 = vadd.f32 %v1267_v24, %v1068_v21  ;;  %v1269_v26 = vpop.f32.mrb[6].mxu0  ;;  %v4360_v21 = vld [vmem:[%s6025_s5 + $0x104] ss:$8 sps:$4 sm:$0xff]   ;;  %v1570_v24 = vrot.slane %v3576_v22, %v4977_v43 }
 0x3ec   :  { %v1272_v27 = vmax.f32 %v1266_v23, 0.0  ;;  %v1270_v28 = vpop.f32.mrb[7].mxu0  ;;  %v1566_v23 = vrot.slane %v3576_v22, %v4972_v41  ;;  %v4396_v22 = vld [vmem:[%s6025_s5 + $0x1c4] ss:$8 sps:$4 sm:$0xff]  }
 0x3ed   :  { %v1273_v29 = vmax.f32 %v1268_v25, 0.0 }
 0x3ee   :  { %v5373_v31 = vpack.c.bf16 %v1272_v27, %v1272_v27 }
 0x3ef   :  { %v5371_v30 = vpack.c.bf16 %v1273_v29, %v1273_v29 }
 0x3f1   :  { %1514 = vmatprep.mubr.bf16.mxu1 %v5371_v30 }
 0x3f2   :  { %1515 = vmatmul.mubr.bf16.vlgmr.msra.gmra.mrb[8].mxu1 %v5373_v31 }
 0x3f3   :  { %1985 = vmatpush1.bf16.msra.mxu1 %v4310_v36  ;;  %v4358_v36 = vld [vmem:[%s6025_s5 + $0x100] ss:$8 sps:$4 sm:$0xff]  }
 0x3f4   :  { %1986 = vmatprep.subr.bf16.mxu1 %v4315_v38  ;;  %v4363_v38 = vld [vmem:[%s6025_s5 + $0x114] ss:$8 sps:$4 sm:$0xff]  }
 0x3f7   :  { %1987 = vmatpush1.bf16.msra.mxu1 %v4313_v39  ;;  %v4454_v39 = vld [vmem:[%s6023_s3 + $0x600] ss:$8 sps:$4 sm:$0xff]  }
 0x3f8   :  { %1988 = vmatprep.subr.bf16.mxu1 %v4318_v40  ;;  %v4456_v40 = vld [vmem:[%s6023_s3 + $0x604] ss:$8 sps:$4 sm:$0xff]  }
 0x3f9   :  { %2235 = vmatprep.subr.bf16.mxu0 %v4456_v40  ;;  %v4406_v40 = vld [vmem:[%s6025_s5 + $0x200] ss:$8 sps:$4 sm:$0xff]  }
 0x3fb   :  { %1989 = vmatpush1.bf16.msra.mxu1 %v4316_v42  ;;  %v4361_v42 = vld [vmem:[%s6025_s5 + $0x110] ss:$8 sps:$4 sm:$0xff]  }
 0x3fc   :  { %1990 = vmatprep.subr.bf16.mxu1 %v4321_v44  ;;  %v4459_v44 = vld [vmem:[%s6023_s3 + $0x614] ss:$8 sps:$4 sm:$0xff]  }
 0x3ff   :  { %1991 = vmatpush1.bf16.msra.mxu1 %v4319_v45  ;;  %v4366_v45 = vld [vmem:[%s6025_s5 + $0x124] ss:$8 sps:$4 sm:$0xff]  }
 0x400   :  { %1992 = vmatprep.subr.bf16.mxu1 %v4324_v46  ;;  %v4457_v46 = vld [vmem:[%s6023_s3 + $0x610] ss:$8 sps:$4 sm:$0xff]  }
 0x403   :  { %1993 = vmatpush1.bf16.msra.mxu1 %v4322_v47  ;;  %v4364_v47 = vld [vmem:[%s6025_s5 + $0x120] ss:$8 sps:$4 sm:$0xff]  }
 0x404   :  { %1994 = vmatprep.subr.bf16.mxu1 %v4327_v48  ;;  %v4369_v48 = vld [vmem:[%s6025_s5 + $0x134] ss:$8 sps:$4 sm:$0xff]  }
 0x407   :  { %1995 = vmatpush1.bf16.msra.mxu1 %v4325_v49  ;;  %v4460_v49 = vld [vmem:[%s6023_s3 + $0x620] ss:$8 sps:$4 sm:$0xff]  }
 0x408   :  { %1996 = vmatprep.subr.bf16.mxu1 %v4330_v50  ;;  %v4465_v50 = vld [vmem:[%s6023_s3 + $0x634] ss:$8 sps:$4 sm:$0xff]  }
 0x40b   :  { %1997 = vmatpush1.bf16.msra.mxu1 %v4328_v51  ;;  %v4367_v51 = vld [vmem:[%s6025_s5 + $0x130] ss:$8 sps:$4 sm:$0xff]  }
 0x40c   :  { %1998 = vmatprep.subr.bf16.mxu1 %v4333_v52  ;;  %v4372_v52 = vld [vmem:[%s6025_s5 + $0x144] ss:$8 sps:$4 sm:$0xff]  }
 0x40f   :  { %1999 = vmatpush1.bf16.msra.mxu1 %v4331_v53  ;;  %v4463_v53 = vld [vmem:[%s6023_s3 + $0x630] ss:$8 sps:$4 sm:$0xff]  }
 0x410   :  { %2000 = vmatprep.subr.bf16.mxu1 %v4336_v54  ;;  %v4468_v54 = vld [vmem:[%s6023_s3 + $0x644] ss:$8 sps:$4 sm:$0xff]  }
 0x413   :  { %2001 = vmatpush1.bf16.msra.mxu1 %v4334_v55  ;;  %v4370_v55 = vld [vmem:[%s6025_s5 + $0x140] ss:$8 sps:$4 sm:$0xff]  }
 0x414   :  { %2002 = vmatprep.subr.bf16.mxu1 %v4339_v56  ;;  %v4375_v56 = vld [vmem:[%s6025_s5 + $0x154] ss:$8 sps:$4 sm:$0xff]  }
 0x417   :  { %2003 = vmatpush1.bf16.msra.mxu1 %v4337_v57  ;;  %v4466_v57 = vld [vmem:[%s6023_s3 + $0x640] ss:$8 sps:$4 sm:$0xff]  }
 0x418   :  { %2004 = vmatprep.subr.bf16.mxu1 %v4342_v58  ;;  %v4471_v58 = vld [vmem:[%s6023_s3 + $0x654] ss:$8 sps:$4 sm:$0xff]  }
 0x41b   :  { %2005 = vmatpush1.bf16.msra.mxu1 %v4340_v59  ;;  %v4373_v59 = vld [vmem:[%s6025_s5 + $0x150] ss:$8 sps:$4 sm:$0xff]  }
 0x41c   :  { %2006 = vmatprep.subr.bf16.mxu1 %v4345_v60  ;;  %v4378_v60 = vld [vmem:[%s6025_s5 + $0x164] ss:$8 sps:$4 sm:$0xff]  }
 0x41f   :  { %2007 = vmatpush1.bf16.msra.mxu1 %v4343_v61  ;;  %v4469_v61 = vld [vmem:[%s6023_s3 + $0x650] ss:$8 sps:$4 sm:$0xff]  }
 0x420   :  { %2008 = vmatprep.subr.bf16.mxu1 %v4348_v62  ;;  %v4474_v62 = vld [vmem:[%s6023_s3 + $0x664] ss:$8 sps:$4 sm:$0xff]  }
 0x423   :  { %2009 = vmatpush1.bf16.msra.mxu1 %v4346_v63  ;;  %v4376_v63 = vld [vmem:[%s6025_s5 + $0x160] ss:$8 sps:$4 sm:$0xff]  }
 0x424   :  { %2010 = vmatprep.subr.bf16.mxu1 %v4351_v2  ;;  %v4381_v2 = vld [vmem:[%s6025_s5 + $0x174] ss:$8 sps:$4 sm:$0xff]  }
 0x427   :  { %2011 = vmatpush1.bf16.msra.mxu1 %v4349_v3  ;;  %v4472_v3 = vld [vmem:[%s6023_s3 + $0x660] ss:$8 sps:$4 sm:$0xff]  }
 0x428   :  { %2012 = vmatprep.subr.bf16.mxu1 %v4354_v17  ;;  %v4388_v17 = vld [vmem:[%s6025_s5 + $0x1a0] ss:$8 sps:$4 sm:$0xff]  }
 0x42b   :  { %2013 = vmatpush1.bf16.msra.mxu1 %v4352_v18  ;;  %v4393_v18 = vld [vmem:[%s6025_s5 + $0x1b4] ss:$8 sps:$4 sm:$0xff]  }
 0x42c   :  { %2014 = vmatprep.subr.bf16.mxu1 %v4357_v19  ;;  %v4484_v19 = vld [vmem:[%s6023_s3 + $0x6a0] ss:$8 sps:$4 sm:$0xff]  }
 0x42f   :  { %2015 = vmatpush1.bf16.msra.mxu1 %v4355_v20  ;;  %v4489_v20 = vld [vmem:[%s6023_s3 + $0x6b4] ss:$8 sps:$4 sm:$0xff]  }
 0x430   :  { %2505 = vmatprep.subr.bf16.mxu1 %v4360_v21  ;;  %v4391_v21 = vld [vmem:[%s6025_s5 + $0x1b0] ss:$8 sps:$4 sm:$0xff]  }
 0x4c5   :  { %v1516_v7 = vpop.f32.mrb[8].mxu1 }
 0x4c6   :  { %v1517_v8 = vadd.f32 %v1516_v7, %v1315_v5  ;;  %v1518_v9 = vpop.f32.mrb[9].mxu1  ;;  %v4379_v5 = vld [vmem:[%s6025_s5 + $0x170] ss:$8 sps:$4 sm:$0xff]  }
 0x4c7   :  { %v1519_v10 = vadd.f32 %v1518_v9, %v1319_v6  ;;  %v1520_v11 = vpop.f32.mrb[10].mxu1  ;;  %v4384_v6 = vld [vmem:[%s6025_s5 + $0x184] ss:$8 sps:$4 sm:$0xff]   ;;  %v4475_v7 = vld [vmem:[%s6023_s3 + $0x670] ss:$8 sps:$4 sm:$0xff]  }
 0x4c8   :  { %v1523_v12 = vmax.f32 %v1517_v8, 0.0  ;;  %v1521_v13 = vpop.f32.mrb[11].mxu1  ;;  %v4480_v8 = vld [vmem:[%s6023_s3 + $0x684] ss:$8 sps:$4 sm:$0xff]   ;;  %v4382_v9 = vld [vmem:[%s6025_s5 + $0x180] ss:$8 sps:$4 sm:$0xff]  }
 0x4c9   :  { %v1524_v14 = vmax.f32 %v1519_v10, 0.0  ;;  %v4387_v10 = vld [vmem:[%s6025_s5 + $0x194] ss:$8 sps:$4 sm:$0xff]   ;;  %v4478_v11 = vld [vmem:[%s6023_s3 + $0x680] ss:$8 sps:$4 sm:$0xff]  }
 0x4ca   :  { %v1525_v16 = vpack.c.bf16 %v1523_v12, %v1523_v12  ;;  %v4483_v12 = vld [vmem:[%s6023_s3 + $0x694] ss:$8 sps:$4 sm:$0xff]   ;;  %v4385_v13 = vld [vmem:[%s6025_s5 + $0x190] ss:$8 sps:$4 sm:$0xff]  }
 0x4cb   :  { %v1526_v15 = vpack.c.bf16 %v1524_v14, %v1524_v14  ;;  %v4390_v14 = vld [vmem:[%s6025_s5 + $0x1a4] ss:$8 sps:$4 sm:$0xff]  }
 0x4cd   :  { %1765 = vmatprep.mubr.bf16.mxu0 %v1526_v15  ;;  %v4481_v15 = vld [vmem:[%s6023_s3 + $0x690] ss:$8 sps:$4 sm:$0xff]  }
 0x4ce   :  { %1766 = vmatmul.mubr.bf16.vlgmr.msra.gmra.mrb[8].mxu0 %v1525_v16  ;;  %v4486_v16 = vld [vmem:[%s6023_s3 + $0x6a4] ss:$8 sps:$4 sm:$0xff]  }
 0x4cf   :  { %2236 = vmatpush1.bf16.msra.mxu0 %v4454_v39  ;;  %v4408_v39 = vld [vmem:[%s6025_s5 + $0x204] ss:$8 sps:$4 sm:$0xff]  }
 0x4d0   :  { %2237 = vmatprep.subr.bf16.mxu0 %v4459_v44  ;;  %v4409_v44 = vld [vmem:[%s6025_s5 + $0x210] ss:$8 sps:$4 sm:$0xff]  }
 0x4d3   :  { %2238 = vmatpush1.bf16.msra.mxu0 %v4457_v46  ;;  %v4412_v46 = vld [vmem:[%s6025_s5 + $0x220] ss:$8 sps:$4 sm:$0xff]  }
 0x5a1   :  { %v1767_v25 = vpop.f32.mrb[8].mxu0 }
 0x5a2   :  { %v1768_v26 = vadd.f32 %v1767_v25, %v1566_v23  ;;  %v1769_v27 = vpop.f32.mrb[9].mxu0  ;;  %v4487_v23 = vld [vmem:[%s6023_s3 + $0x6b0] ss:$8 sps:$4 sm:$0xff]   ;;  %v4394_v25 = vld [vmem:[%s6025_s5 + $0x1c0] ss:$8 sps:$4 sm:$0xff]  }
 0x5a3   :  { %v1770_v28 = vadd.f32 %v1769_v27, %v1570_v24  ;;  %v1771_v29 = vpop.f32.mrb[10].mxu0  ;;  %v4492_v24 = vld [vmem:[%s6023_s3 + $0x6c4] ss:$8 sps:$4 sm:$0xff]   ;;  %v4490_v27 = vld [vmem:[%s6023_s3 + $0x6c0] ss:$8 sps:$4 sm:$0xff]  }
 0x5a4   :  { %v1774_v32 = vmax.f32 %v1768_v26, 0.0  ;;  %v1772_v33 = vpop.f32.mrb[11].mxu0  ;;  %v4399_v26 = vld [vmem:[%s6025_s5 + $0x1d4] ss:$8 sps:$4 sm:$0xff]   ;;  %v4397_v29 = vld [vmem:[%s6025_s5 + $0x1d0] ss:$8 sps:$4 sm:$0xff]  }
 0x5a5   :  { %v1775_v34 = vmax.f32 %v1770_v28, 0.0  ;;  %v4495_v28 = vld [vmem:[%s6023_s3 + $0x6d4] ss:$8 sps:$4 sm:$0xff]   ;;  %v4493_v33 = vld [vmem:[%s6023_s3 + $0x6d0] ss:$8 sps:$4 sm:$0xff]  }
 0x5a6   :  { %v5503_v37 = vpack.c.bf16 %v1774_v32, %v1774_v32  ;;  %v4402_v32 = vld [vmem:[%s6025_s5 + $0x1e4] ss:$8 sps:$4 sm:$0xff]  }
 0x5a7   :  { %v5498_v35 = vpack.c.bf16 %v1775_v34, %v1775_v34  ;;  %v4400_v34 = vld [vmem:[%s6025_s5 + $0x1e0] ss:$8 sps:$4 sm:$0xff]  }
 0x5a9   :  { %2016 = vmatprep.mubr.bf16.mxu1 %v5498_v35 }
 0x5aa   :  { %2017 = vmatmul.mubr.bf16.vlgmr.msra.gmra.mrb[12].mxu1 %v5503_v37 }
 0x5ab   :  { %2506 = vmatpush1.bf16.msra.mxu1 %v4358_v36  ;;  %2537 = vmatprep.mubr.bf16.mxu1 %v5371_v30  ;;  %v4462_v30 = vld [vmem:[%s6023_s3 + $0x624] ss:$8 sps:$4 sm:$0xff]   ;;  %v4405_v36 = vld [vmem:[%s6025_s5 + $0x1f4] ss:$8 sps:$4 sm:$0xff]  }
 0x5ac   :  { %2507 = vmatprep.subr.bf16.mxu1 %v4363_v38  ;;  %2239 = vmatprep.subr.bf16.mxu0 %v4462_v30  ;;  %v4403_v38 = vld [vmem:[%s6025_s5 + $0x1f0] ss:$8 sps:$4 sm:$0xff]   ;;  %v4420_v30 = vld [vmem:[%s6025_s5 + $0x244] ss:$8 sps:$4 sm:$0xff]  }
 0x5ad   :  { %2240 = vmatpush1.bf16.msra.mxu0 %v4460_v49  ;;  %v4421_v49 = vld [vmem:[%s6025_s5 + $0x250] ss:$8 sps:$4 sm:$0xff]  }
 0x5ae   :  { %2241 = vmatprep.subr.bf16.mxu0 %v4465_v50  ;;  %v4426_v50 = vld [vmem:[%s6025_s5 + $0x264] ss:$8 sps:$4 sm:$0xff]  }
 0x5af   :  { %2508 = vmatpush1.bf16.msra.mxu1 %v4361_v42  ;;  %v4411_v42 = vld [vmem:[%s6025_s5 + $0x214] ss:$8 sps:$4 sm:$0xff]  }
 0x5b0   :  { %2509 = vmatprep.subr.bf16.mxu1 %v4366_v45  ;;  %v4414_v45 = vld [vmem:[%s6025_s5 + $0x224] ss:$8 sps:$4 sm:$0xff]  }
 0x5b1   :  { %2242 = vmatpush1.bf16.msra.mxu0 %v4463_v53  ;;  %v4424_v53 = vld [vmem:[%s6025_s5 + $0x260] ss:$8 sps:$4 sm:$0xff]  }
 0x5b2   :  { %2243 = vmatprep.subr.bf16.mxu0 %v4468_v54  ;;  %v4429_v54 = vld [vmem:[%s6025_s5 + $0x274] ss:$8 sps:$4 sm:$0xff]  }
 0x5b3   :  { %2510 = vmatpush1.bf16.msra.mxu1 %v4364_v47  ;;  %v4418_v47 = vld [vmem:[%s6025_s5 + $0x240] ss:$8 sps:$4 sm:$0xff]  }
 0x5b4   :  { %2511 = vmatprep.subr.bf16.mxu1 %v4369_v48  ;;  %v4423_v48 = vld [vmem:[%s6025_s5 + $0x254] ss:$8 sps:$4 sm:$0xff]  }
 0x5b5   :  { %2244 = vmatpush1.bf16.msra.mxu0 %v4466_v57  ;;  %v4427_v57 = vld [vmem:[%s6025_s5 + $0x270] ss:$8 sps:$4 sm:$0xff]  }
 0x5b6   :  { %2245 = vmatprep.subr.bf16.mxu0 %v4471_v58  ;;  %v4432_v58 = vld [vmem:[%s6025_s5 + $0x284] ss:$8 sps:$4 sm:$0xff]  }
 0x5b7   :  { %2512 = vmatpush1.bf16.msra.mxu1 %v4367_v51  ;;  %v4498_v51 = vld [vmem:[%s6023_s3 + $0x6e4] ss:$8 sps:$4 sm:$0xff]  }
 0x5b8   :  { %2513 = vmatprep.subr.bf16.mxu1 %v4372_v52  ;;  %v4496_v52 = vld [vmem:[%s6023_s3 + $0x6e0] ss:$8 sps:$4 sm:$0xff]  }
 0x5b9   :  { %2246 = vmatpush1.bf16.msra.mxu0 %v4469_v61  ;;  %v4435_v61 = vld [vmem:[%s6025_s5 + $0x294] ss:$8 sps:$4 sm:$0xff]  }
 0x5ba   :  { %2247 = vmatprep.subr.bf16.mxu0 %v4474_v62  ;;  %v4433_v62 = vld [vmem:[%s6025_s5 + $0x290] ss:$8 sps:$4 sm:$0xff]  }
 0x5bb   :  { %2514 = vmatpush1.bf16.msra.mxu1 %v4370_v55  ;;  %v4501_v55 = vld [vmem:[%s6023_s3 + $0x6f4] ss:$8 sps:$4 sm:$0xff]  }
 0x5bc   :  { %2515 = vmatprep.subr.bf16.mxu1 %v4375_v56  ;;  %v4499_v56 = vld [vmem:[%s6023_s3 + $0x6f0] ss:$8 sps:$4 sm:$0xff]  }
 0x5bd   :  { %2248 = vmatpush1.bf16.msra.mxu0 %v4472_v3  ;;  %v4441_v3 = vld [vmem:[%s6025_s5 + $0x2b4] ss:$8 sps:$4 sm:$0xff]  }
 0x5be   :  { %2249 = vmatprep.subr.bf16.mxu0 %v4477_v4  ;;  %v4439_v4 = vld [vmem:[%s6025_s5 + $0x2b0] ss:$8 sps:$4 sm:$0xff]  }
 0x5bf   :  { %2516 = vmatpush1.bf16.msra.mxu1 %v4373_v59  ;;  %v4504_v59 = vld [vmem:[%s6025_s5 + $0x4] ss:$8 sps:$4 sm:$0xff]  }
 0x5c0   :  { %2517 = vmatprep.subr.bf16.mxu1 %v4378_v60  ;;  %v4430_v60 = vld [vmem:[%s6025_s5 + $0x280] ss:$8 sps:$4 sm:$0xff]  }
 0x5c1   :  { %2250 = vmatpush1.bf16.msra.mxu0 %v4475_v7  ;;  %v4447_v7 = vld [vmem:[%s6025_s5 + $0x2d4] ss:$8 sps:$4 sm:$0xff]  }
 0x5c2   :  { %2251 = vmatprep.subr.bf16.mxu0 %v4480_v8  ;;  %v4445_v8 = vld [vmem:[%s6025_s5 + $0x2d0] ss:$8 sps:$4 sm:$0xff]  }
 0x5c3   :  { %2518 = vmatpush1.bf16.msra.mxu1 %v4376_v63  ;;  %v4438_v63 = vld [vmem:[%s6025_s5 + $0x2a4] ss:$8 sps:$4 sm:$0xff]  }
 0x5c4   :  { %2519 = vmatprep.subr.bf16.mxu1 %v4381_v2  ;;  %v4436_v2 = vld [vmem:[%s6025_s5 + $0x2a0] ss:$8 sps:$4 sm:$0xff]  }
 0x5c5   :  { %2252 = vmatpush1.bf16.msra.mxu0 %v4478_v11  ;;  %v4453_v11 = vld [vmem:[%s6025_s5 + $0x2f4] ss:$8 sps:$4 sm:$0xff]  }
 0x5c6   :  { %2253 = vmatprep.subr.bf16.mxu0 %v4483_v12  ;;  %v4451_v12 = vld [vmem:[%s6025_s5 + $0x2f0] ss:$8 sps:$4 sm:$0xff]  }
 0x5c7   :  { %2520 = vmatpush1.bf16.msra.mxu1 %v4379_v5  ;;  %v4444_v5 = vld [vmem:[%s6025_s5 + $0x2c4] ss:$8 sps:$4 sm:$0xff]  }
 0x5c8   :  { %2521 = vmatprep.subr.bf16.mxu1 %v4384_v6  ;;  %v4442_v6 = vld [vmem:[%s6025_s5 + $0x2c0] ss:$8 sps:$4 sm:$0xff]  }
 0x5c9   :  { %2254 = vmatpush1.bf16.msra.mxu0 %v4481_v15 }
 0x5ca   :  { %2255 = vmatprep.subr.bf16.mxu0 %v4486_v16 }
 0x5cb   :  { %2522 = vmatpush1.bf16.msra.mxu1 %v4382_v9  ;;  %v4450_v9 = vld [vmem:[%s6025_s5 + $0x2e4] ss:$8 sps:$4 sm:$0xff]  }
 0x5cc   :  { %2523 = vmatprep.subr.bf16.mxu1 %v4387_v10  ;;  %v4448_v10 = vld [vmem:[%s6025_s5 + $0x2e0] ss:$8 sps:$4 sm:$0xff]  }
 0x5cd   :  { %2256 = vmatpush1.bf16.msra.mxu0 %v4484_v19 }
 0x5ce   :  { %2257 = vmatprep.subr.bf16.mxu0 %v4489_v20 }
 0x5cf   :  { %2524 = vmatpush1.bf16.msra.mxu1 %v4385_v13  ;;  %v3641_v13 = vld [vmem:[%s6024_s4 + $0xa] sm:$0x3] }
 0x5d0   :  { %2525 = vmatprep.subr.bf16.mxu1 %v4390_v14  ;;  %v1817_v14 = vrot.slane %v3641_v13, %v4972_v41  ;;  %v1821_v15 = vrot.slane %v3641_v13, %v4977_v43  ;;  %v4573_v13 = vld [vmem:[%s6025_s5 + $0x374] ss:$8 sps:$4 sm:$0xff]  }
 0x5d1   :  { %2258 = vmatpush1.bf16.msra.mxu0 %v4487_v23 }
 0x5d2   :  { %2259 = vmatprep.subr.bf16.mxu0 %v4492_v24 }
 0x5d3   :  { %2526 = vmatpush1.bf16.msra.mxu1 %v4388_v17 }
 0x5d4   :  { %2527 = vmatprep.subr.bf16.mxu1 %v4393_v18 }
 0x5d5   :  { %2260 = vmatpush1.bf16.msra.mxu0 %v4490_v27  ;;  %v4505_v27 = vld [vmem:[%s6025_s5 + $0x10] ss:$8 sps:$4 sm:$0xff]  }
 0x5d6   :  { %2261 = vmatprep.subr.bf16.mxu0 %v4495_v28  ;;  %v4510_v28 = vld [vmem:[%s6025_s5 + $0x24] ss:$8 sps:$4 sm:$0xff]  }
 0x5d7   :  { %2528 = vmatpush1.bf16.msra.mxu1 %v4391_v21 }
 0x5d8   :  { %2529 = vmatprep.subr.bf16.mxu1 %v4396_v22 }
 0x5d9   :  { %2262 = vmatpush1.bf16.msra.mxu0 %v4493_v33  ;;  %v4516_v33 = vld [vmem:[%s6025_s5 + $0x44] ss:$8 sps:$4 sm:$0xff]  }
 0x5da   :  { %2263 = vmatprep.subr.bf16.mxu0 %v4498_v51  ;;  %v4538_v51 = vld [vmem:[%s6025_s5 + $0xc0] ss:$8 sps:$4 sm:$0xff]  }
 0x5db   :  { %2530 = vmatpush1.bf16.msra.mxu1 %v4394_v25 }
 0x5dc   :  { %2531 = vmatprep.subr.bf16.mxu1 %v4399_v26  ;;  %v4507_v26 = vld [vmem:[%s6025_s5 + $0x14] ss:$8 sps:$4 sm:$0xff]  }
 0x5dd   :  { %2264 = vmatpush1.bf16.msra.mxu0 %v4496_v52  ;;  %v4543_v52 = vld [vmem:[%s6025_s5 + $0xd4] ss:$8 sps:$4 sm:$0xff]  }
 0x5de   :  { %2265 = vmatprep.subr.bf16.mxu0 %v4501_v55  ;;  %v4544_v55 = vld [vmem:[%s6025_s5 + $0xe0] ss:$8 sps:$4 sm:$0xff]  }
 0x5df   :  { %2532 = vmatpush1.bf16.msra.mxu1 %v4397_v29  ;;  %v4508_v29 = vld [vmem:[%s6025_s5 + $0x20] ss:$8 sps:$4 sm:$0xff]  }
 0x5e0   :  { %2533 = vmatprep.subr.bf16.mxu1 %v4402_v32  ;;  %v4513_v32 = vld [vmem:[%s6025_s5 + $0x34] ss:$8 sps:$4 sm:$0xff]  }
 0x5e1   :  { %2266 = vmatpush1.bf16.msra.mxu0 %v4499_v56  ;;  %v4549_v56 = vld [vmem:[%s6025_s5 + $0xf4] ss:$8 sps:$4 sm:$0xff]  }
 0x5e2   :  { %2706 = vmatprep.subr.bf16.mxu0 %v4504_v59 }
 0x5e3   :  { %2534 = vmatpush1.bf16.msra.mxu1 %v4400_v34  ;;  %v4514_v34 = vld [vmem:[%s6025_s5 + $0x40] ss:$8 sps:$4 sm:$0xff]  }
 0x5e4   :  { %2535 = vmatprep.subr.bf16.mxu1 %v4405_v36  ;;  %v4519_v36 = vld [vmem:[%s6025_s5 + $0x54] ss:$8 sps:$4 sm:$0xff]  }
 0x5e7   :  { %2536 = vmatpush1.bf16.msra.mxu1 %v4403_v38  ;;  %v4517_v38 = vld [vmem:[%s6025_s5 + $0x50] ss:$8 sps:$4 sm:$0xff]  }
 0x5e8   :  { %2940 = vmatprep.subr.bf16.mxu1 %v4408_v39  ;;  %v4522_v39 = vld [vmem:[%s6025_s5 + $0x64] ss:$8 sps:$4 sm:$0xff]  }
 0x5ea   :  { %2538 = vmatmul.mubr.bf16.vlgmr.msra.gmra.mrb[16].mxu1 %v5373_v31  ;;  %v4417_v31 = vld [vmem:[%s6025_s5 + $0x234] ss:$8 sps:$4 sm:$0xff]  }
 0x5eb   :  { %2941 = vmatpush1.bf16.msra.mxu1 %v4406_v40  ;;  %2972 = vmatprep.mubr.bf16.mxu1 %v5498_v35  ;;  %v4415_v35 = vld [vmem:[%s6025_s5 + $0x230] ss:$8 sps:$4 sm:$0xff]   ;;  %v4520_v40 = vld [vmem:[%s6025_s5 + $0x60] ss:$8 sps:$4 sm:$0xff]  }
 0x5ec   :  { %2942 = vmatprep.subr.bf16.mxu1 %v4411_v42  ;;  %v4525_v42 = vld [vmem:[%s6025_s5 + $0x74] ss:$8 sps:$4 sm:$0xff]  }
 0x5ef   :  { %2943 = vmatpush1.bf16.msra.mxu1 %v4409_v44  ;;  %v4523_v44 = vld [vmem:[%s6025_s5 + $0x70] ss:$8 sps:$4 sm:$0xff]  }
 0x5f0   :  { %2944 = vmatprep.subr.bf16.mxu1 %v4414_v45  ;;  %v4528_v45 = vld [vmem:[%s6025_s5 + $0x84] ss:$8 sps:$4 sm:$0xff]  }
 0x5f3   :  { %2945 = vmatpush1.bf16.msra.mxu1 %v4412_v46  ;;  %v4526_v46 = vld [vmem:[%s6025_s5 + $0x80] ss:$8 sps:$4 sm:$0xff]  }
 0x5f4   :  { %2946 = vmatprep.subr.bf16.mxu1 %v4417_v31  ;;  %v4531_v31 = vld [vmem:[%s6025_s5 + $0x94] ss:$8 sps:$4 sm:$0xff]  }
 0x5f7   :  { %2947 = vmatpush1.bf16.msra.mxu1 %v4415_v35  ;;  %v4529_v35 = vld [vmem:[%s6025_s5 + $0x90] ss:$8 sps:$4 sm:$0xff]  }
 0x5f8   :  { %2948 = vmatprep.subr.bf16.mxu1 %v4420_v30  ;;  %v4534_v30 = vld [vmem:[%s6025_s5 + $0xa4] ss:$8 sps:$4 sm:$0xff]  }
 0x5fb   :  { %2949 = vmatpush1.bf16.msra.mxu1 %v4418_v47  ;;  %v4532_v47 = vld [vmem:[%s6025_s5 + $0xa0] ss:$8 sps:$4 sm:$0xff]  }
 0x5fc   :  { %2950 = vmatprep.subr.bf16.mxu1 %v4423_v48  ;;  %v4537_v48 = vld [vmem:[%s6025_s5 + $0xb4] ss:$8 sps:$4 sm:$0xff]  }
 0x5ff   :  { %2951 = vmatpush1.bf16.msra.mxu1 %v4421_v49  ;;  %v4535_v49 = vld [vmem:[%s6025_s5 + $0xb0] ss:$8 sps:$4 sm:$0xff]  }
 0x600   :  { %2952 = vmatprep.subr.bf16.mxu1 %v4426_v50  ;;  %v4540_v50 = vld [vmem:[%s6025_s5 + $0xc4] ss:$8 sps:$4 sm:$0xff]  }
 0x603   :  { %2953 = vmatpush1.bf16.msra.mxu1 %v4424_v53  ;;  %v4541_v53 = vld [vmem:[%s6025_s5 + $0xd0] ss:$8 sps:$4 sm:$0xff]  }
 0x604   :  { %2954 = vmatprep.subr.bf16.mxu1 %v4429_v54  ;;  %v4546_v54 = vld [vmem:[%s6025_s5 + $0xe4] ss:$8 sps:$4 sm:$0xff]  }
 0x607   :  { %2955 = vmatpush1.bf16.msra.mxu1 %v4427_v57 }
 0x608   :  { %2956 = vmatprep.subr.bf16.mxu1 %v4432_v58 }
 0x60b   :  { %2957 = vmatpush1.bf16.msra.mxu1 %v4430_v60  ;;  %v4547_v60 = vld [vmem:[%s6025_s5 + $0xf0] ss:$8 sps:$4 sm:$0xff]  }
 0x60c   :  { %2958 = vmatprep.subr.bf16.mxu1 %v4435_v61 }
 0x60f   :  { %2959 = vmatpush1.bf16.msra.mxu1 %v4433_v62  ;;  %v4552_v62 = vld [vmem:[%s6025_s5 + $0x304] ss:$8 sps:$4 sm:$0xff]  }
 0x610   :  { %2960 = vmatprep.subr.bf16.mxu1 %v4438_v63  ;;  %v4550_v63 = vld [vmem:[%s6025_s5 + $0x300] ss:$8 sps:$4 sm:$0xff]  }
 0x613   :  { %2961 = vmatpush1.bf16.msra.mxu1 %v4436_v2  ;;  %v4555_v2 = vld [vmem:[%s6025_s5 + $0x314] ss:$8 sps:$4 sm:$0xff]  }
 0x614   :  { %2962 = vmatprep.subr.bf16.mxu1 %v4441_v3  ;;  %v4553_v3 = vld [vmem:[%s6025_s5 + $0x310] ss:$8 sps:$4 sm:$0xff]  }
 0x617   :  { %2963 = vmatpush1.bf16.msra.mxu1 %v4439_v4  ;;  %v4558_v4 = vld [vmem:[%s6025_s5 + $0x324] ss:$8 sps:$4 sm:$0xff]  }
 0x618   :  { %2964 = vmatprep.subr.bf16.mxu1 %v4444_v5  ;;  %v4556_v5 = vld [vmem:[%s6025_s5 + $0x320] ss:$8 sps:$4 sm:$0xff]  }
 0x61b   :  { %2965 = vmatpush1.bf16.msra.mxu1 %v4442_v6  ;;  %v4559_v6 = vld [vmem:[%s6025_s5 + $0x330] ss:$8 sps:$4 sm:$0xff]  }
 0x61c   :  { %2966 = vmatprep.subr.bf16.mxu1 %v4447_v7  ;;  %v4564_v7 = vld [vmem:[%s6025_s5 + $0x344] ss:$8 sps:$4 sm:$0xff]  }
 0x61f   :  { %2967 = vmatpush1.bf16.msra.mxu1 %v4445_v8  ;;  %v4562_v8 = vld [vmem:[%s6025_s5 + $0x340] ss:$8 sps:$4 sm:$0xff]  }
 0x620   :  { %2968 = vmatprep.subr.bf16.mxu1 %v4450_v9  ;;  %v4567_v9 = vld [vmem:[%s6025_s5 + $0x354] ss:$8 sps:$4 sm:$0xff]  }
 0x623   :  { %2969 = vmatpush1.bf16.msra.mxu1 %v4448_v10  ;;  %v4565_v10 = vld [vmem:[%s6025_s5 + $0x350] ss:$8 sps:$4 sm:$0xff]  }
 0x624   :  { %2970 = vmatprep.subr.bf16.mxu1 %v4453_v11  ;;  %v4570_v11 = vld [vmem:[%s6025_s5 + $0x364] ss:$8 sps:$4 sm:$0xff]  }
 0x627   :  { %2971 = vmatpush1.bf16.msra.mxu1 %v4451_v12  ;;  %v4568_v12 = vld [vmem:[%s6025_s5 + $0x360] ss:$8 sps:$4 sm:$0xff]  }
 0x62a   :  { %2973 = vmatmul.mubr.bf16.vlgmr.msra.gmra.mrb[20].mxu1 %v5503_v37  ;;  %v4502_v37 = vld [vmem:[%s6025_s5] ss:$8 sps:$4 sm:$0xff]  }
 0x67d   :  { %v2018_v16 = vpop.f32.mrb[12].mxu1 }
 0x67e   :  { %v2019_v17 = vadd.f32 %v2018_v16, %v1817_v14  ;;  %v2020_v18 = vpop.f32.mrb[13].mxu1  ;;  %v4571_v14 = vld [vmem:[%s6025_s5 + $0x370] ss:$8 sps:$4 sm:$0xff]   ;;  %v4574_v16 = vld [vmem:[%s6025_s5 + $0x380] ss:$8 sps:$4 sm:$0xff]  }
 0x67f   :  { %v2021_v19 = vadd.f32 %v2020_v18, %v1821_v15  ;;  %v2022_v20 = vpop.f32.mrb[14].mxu1  ;;  %v4576_v15 = vld [vmem:[%s6025_s5 + $0x384] ss:$8 sps:$4 sm:$0xff]   ;;  %v4577_v18 = vld [vmem:[%s6025_s5 + $0x390] ss:$8 sps:$4 sm:$0xff]  }
 0x680   :  { %v2025_v21 = vmax.f32 %v2019_v17, 0.0  ;;  %v2023_v22 = vpop.f32.mrb[15].mxu1  ;;  %v4579_v17 = vld [vmem:[%s6025_s5 + $0x394] ss:$8 sps:$4 sm:$0xff]   ;;  %v4580_v20 = vld [vmem:[%s6025_s5 + $0x3a0] ss:$8 sps:$4 sm:$0xff]  }
 0x681   :  { %v2026_v23 = vmax.f32 %v2021_v19, 0.0  ;;  %v4582_v19 = vld [vmem:[%s6025_s5 + $0x3a4] ss:$8 sps:$4 sm:$0xff]   ;;  %v4583_v22 = vld [vmem:[%s6025_s5 + $0x3b0] ss:$8 sps:$4 sm:$0xff]  }
 0x682   :  { %v2027_v25 = vpack.c.bf16 %v2025_v21, %v2025_v21  ;;  %v4585_v21 = vld [vmem:[%s6025_s5 + $0x3b4] ss:$8 sps:$4 sm:$0xff]  }
 0x683   :  { %v2028_v24 = vpack.c.bf16 %v2026_v23, %v2026_v23  ;;  %v4588_v23 = vld [vmem:[%s6025_s5 + $0x3c4] ss:$8 sps:$4 sm:$0xff]  }
 0x685   :  { %2267 = vmatprep.mubr.bf16.mxu0 %v2028_v24  ;;  %v4586_v24 = vld [vmem:[%s6025_s5 + $0x3c0] ss:$8 sps:$4 sm:$0xff]  }
 0x686   :  { %2268 = vmatmul.mubr.bf16.vlgmr.msra.gmra.mrb[12].mxu0 %v2027_v25  ;;  %v4589_v25 = vld [vmem:[%s6025_s5 + $0x3d0] ss:$8 sps:$4 sm:$0xff]  }
 0x687   :  { %2707 = vmatpush1.bf16.msra.mxu0 %v4502_v37  ;;  %2738 = vmatprep.mubr.bf16.mxu0 %v5163_v0  ;;  %v4511_v0 = vld [vmem:[%s6025_s5 + $0x30] ss:$8 sps:$4 sm:$0xff]   ;;  %v4591_v37 = vld [vmem:[%s6025_s5 + $0x3d4] ss:$8 sps:$4 sm:$0xff]  }
 0x688   :  { %2708 = vmatprep.subr.bf16.mxu0 %v4507_v26  ;;  %v4594_v26 = vld [vmem:[%s6025_s5 + $0x3e4] ss:$8 sps:$4 sm:$0xff]  }
 0x68b   :  { %2709 = vmatpush1.bf16.msra.mxu0 %v4505_v27  ;;  %v4592_v27 = vld [vmem:[%s6025_s5 + $0x3e0] ss:$8 sps:$4 sm:$0xff]  }
 0x68c   :  { %2710 = vmatprep.subr.bf16.mxu0 %v4510_v28  ;;  %v4597_v28 = vld [vmem:[%s6025_s5 + $0x3f4] ss:$8 sps:$4 sm:$0xff]  }
 0x68f   :  { %2711 = vmatpush1.bf16.msra.mxu0 %v4508_v29 }
 0x690   :  { %2712 = vmatprep.subr.bf16.mxu0 %v4513_v32 }
 0x693   :  { %2713 = vmatpush1.bf16.msra.mxu0 %v4511_v0 }
 0x694   :  { %2714 = vmatprep.subr.bf16.mxu0 %v4516_v33  ;;  %v4595_v33 = vld [vmem:[%s6025_s5 + $0x3f0] ss:$8 sps:$4 sm:$0xff]  }
 0x697   :  { %2715 = vmatpush1.bf16.msra.mxu0 %v4514_v34 }
 0x698   :  { %2716 = vmatprep.subr.bf16.mxu0 %v4519_v36  ;;  %v3706_v36 = vld [vmem:[%s6024_s4 + $0xc] sm:$0x3] }
 0x69b   :  { %2717 = vmatpush1.bf16.msra.mxu0 %v4517_v38  ;;  %v2068_v38 = vrot.slane %v3706_v36, %v4972_v41 }
 0x69c   :  { %2718 = vmatprep.subr.bf16.mxu0 %v4522_v39  ;;  %v2072_v39 = vrot.slane %v3706_v36, %v4977_v43 }
 0x69f   :  { %2719 = vmatpush1.bf16.msra.mxu0 %v4520_v40 }
 0x6a0   :  { %2720 = vmatprep.subr.bf16.mxu0 %v4525_v42 }
 0x6a3   :  { %2721 = vmatpush1.bf16.msra.mxu0 %v4523_v44 }
 0x6a4   :  { %2722 = vmatprep.subr.bf16.mxu0 %v4528_v45 }
 0x6a7   :  { %2723 = vmatpush1.bf16.msra.mxu0 %v4526_v46 }
 0x6a8   :  { %2724 = vmatprep.subr.bf16.mxu0 %v4531_v31 }
 0x6ab   :  { %2725 = vmatpush1.bf16.msra.mxu0 %v4529_v35 }
 0x6ac   :  { %2726 = vmatprep.subr.bf16.mxu0 %v4534_v30 }
 0x6af   :  { %2727 = vmatpush1.bf16.msra.mxu0 %v4532_v47 }
 0x6b0   :  { %2728 = vmatprep.subr.bf16.mxu0 %v4537_v48 }
 0x6b3   :  { %2729 = vmatpush1.bf16.msra.mxu0 %v4535_v49 }
 0x6b4   :  { %2730 = vmatprep.subr.bf16.mxu0 %v4540_v50 }
 0x6b7   :  { %2731 = vmatpush1.bf16.msra.mxu0 %v4538_v51 }
 0x6b8   :  { %2732 = vmatprep.subr.bf16.mxu0 %v4543_v52 }
 0x6bb   :  { %2733 = vmatpush1.bf16.msra.mxu0 %v4541_v53 }
 0x6bc   :  { %2734 = vmatprep.subr.bf16.mxu0 %v4546_v54 }
 0x6bd   :  { %v5892_v57 = vpop.f32.mrb[16].mxu1 }
 0x6be   :  { %v5894_v58 = vpop.f32.mrb[17].mxu1 }
 0x6bf   :  { %v2543_v59 = vpop.f32.mrb[18].mxu1  ;;  %2735 = vmatpush1.bf16.msra.mxu0 %v4544_v55 }
 0x6c0   :  { %v2544_v61 = vpop.f32.mrb[19].mxu1  ;;  %2736 = vmatprep.subr.bf16.mxu0 %v4549_v56  ;;  %v3219_v59 = vld [vmem:[%s6026_s6] sm:$0x3] }
 0x6c3   :  { %2737 = vmatpush1.bf16.msra.mxu0 %v4547_v60  ;;  %v3224_v60 = vrot.slane %v3219_v59, %v4972_v41 }
 0x6c4   :  { %3176 = vmatprep.subr.bf16.mxu0 %v4552_v62  ;;  %v3228_v62 = vrot.slane %v3219_v59, %v4977_v43 }
 0x6c6   :  { %2739 = vmatmul.mubr.bf16.vlgmr.msra.gmra.mrb[16].mxu0 %v5165_v1  ;;  %v4561_v1 = vld [vmem:[%s6025_s5 + $0x334] ss:$8 sps:$4 sm:$0xff]  }
 0x6c7   :  { %3177 = vmatpush1.bf16.msra.mxu0 %v4550_v63 }
 0x6c8   :  { %3178 = vmatprep.subr.bf16.mxu0 %v4555_v2 }
 0x6cb   :  { %3179 = vmatpush1.bf16.msra.mxu0 %v4553_v3 }
 0x6cc   :  { %3180 = vmatprep.subr.bf16.mxu0 %v4558_v4 }
 0x6cf   :  { %3181 = vmatpush1.bf16.msra.mxu0 %v4556_v5 }
 0x6d0   :  { %3182 = vmatprep.subr.bf16.mxu0 %v4561_v1 }
 0x6d3   :  { %3183 = vmatpush1.bf16.msra.mxu0 %v4559_v6 }
 0x6d4   :  { %3184 = vmatprep.subr.bf16.mxu0 %v4564_v7 }
 0x6d7   :  { %3185 = vmatpush1.bf16.msra.mxu0 %v4562_v8 }
 0x6d8   :  { %3186 = vmatprep.subr.bf16.mxu0 %v4567_v9 }
 0x6db   :  { %3187 = vmatpush1.bf16.msra.mxu0 %v4565_v10 }
 0x6dc   :  { %3188 = vmatprep.subr.bf16.mxu0 %v4570_v11 }
 0x6df   :  { %3189 = vmatpush1.bf16.msra.mxu0 %v4568_v12 }
 0x6e0   :  { %3190 = vmatprep.subr.bf16.mxu0 %v4573_v13 }
 0x6e3   :  { %3191 = vmatpush1.bf16.msra.mxu0 %v4571_v14 }
 0x6e4   :  { %3192 = vmatprep.subr.bf16.mxu0 %v4576_v15 }
 0x6e7   :  { %3193 = vmatpush1.bf16.msra.mxu0 %v4574_v16 }
 0x6e8   :  { %3194 = vmatprep.subr.bf16.mxu0 %v4579_v17 }
 0x6eb   :  { %3195 = vmatpush1.bf16.msra.mxu0 %v4577_v18 }
 0x6ec   :  { %3196 = vmatprep.subr.bf16.mxu0 %v4582_v19 }
 0x6ef   :  { %3197 = vmatpush1.bf16.msra.mxu0 %v4580_v20 }
 0x6f0   :  { %3198 = vmatprep.subr.bf16.mxu0 %v4585_v21 }
 0x6f3   :  { %3199 = vmatpush1.bf16.msra.mxu0 %v4583_v22 }
 0x6f4   :  { %3200 = vmatprep.subr.bf16.mxu0 %v4588_v23 }
 0x6f7   :  { %3201 = vmatpush1.bf16.msra.mxu0 %v4586_v24 }
 0x6f8   :  { %3202 = vmatprep.subr.bf16.mxu0 %v4591_v37 }
 0x6fb   :  { %3203 = vmatpush1.bf16.msra.mxu0 %v4589_v25 }
 0x6fc   :  { %3204 = vmatprep.subr.bf16.mxu0 %v4594_v26 }
 0x6fd   :  { %v2974_v29 = vpop.f32.mrb[20].mxu1 }
 0x6fe   :  { %v2976_v32 = vpop.f32.mrb[21].mxu1 }
 0x6ff   :  { %v2978_v0 = vpop.f32.mrb[22].mxu1  ;;  %3205 = vmatpush1.bf16.msra.mxu0 %v4592_v27 }
 0x700   :  { %v2979_v34 = vpop.f32.mrb[23].mxu1  ;;  %3206 = vmatprep.subr.bf16.mxu0 %v4597_v28 }
 0x703   :  { %3207 = vmatpush1.bf16.msra.mxu0 %v4595_v33 }
 0x759   :  { %v2269_v40 = vpop.f32.mrb[12].mxu0 }
 0x75a   :  { %v2270_v42 = vadd.f32 %v2269_v40, %v2068_v38  ;;  %v2271_v44 = vpop.f32.mrb[13].mxu0 }
 0x75b   :  { %v2272_v45 = vadd.f32 %v2271_v44, %v2072_v39  ;;  %v2273_v46 = vpop.f32.mrb[14].mxu0 }
 0x75c   :  { %v2276_v31 = vmax.f32 %v2270_v42, 0.0  ;;  %v2274_v35 = vpop.f32.mrb[15].mxu0 }
 0x75d   :  { %v2277_v30 = vmax.f32 %v2272_v45, 0.0 }
 0x75e   :  { %v2278_v48 = vpack.c.bf16 %v2276_v31, %v2276_v31 }
 0x75f   :  { %v2279_v47 = vpack.c.bf16 %v2277_v30, %v2277_v30 }
 0x761   :  { %3208 = vmatprep.mubr.bf16.mxu0 %v2279_v47 }
 0x762   :  { %3209 = vmatmul.mubr.bf16.vlgmr.msra.gmra.mrb[20].mxu0 %v2278_v48 }
 0x799   :  { %v2740_v49 = vpop.f32.mrb[16].mxu0 }
 0x79a   :  { %v2741_v50 = vadd.f32 %v2740_v49, %v5892_v57  ;;  %v2742_v51 = vpop.f32.mrb[17].mxu0 }
 0x79b   :  { %v2743_v52 = vadd.f32 %v2742_v51, %v5894_v58  ;;  %v2744_v53 = vpop.f32.mrb[18].mxu0 }
 0x79c   :  { %v2745_v54 = vpop.f32.mrb[19].mxu0  ;;  %v2981_v55 = vadd.f32 %v2974_v29, %v2741_v50 }
 0x79d   :  { %v2982_v56 = vadd.f32 %v2976_v32, %v2743_v52 }
 0x835   :  { %v3210_v61 = vpop.f32.mrb[20].mxu0 }
 0x836   :  { %v3217_v63 = vadd.f32 %v3210_v61, %v2981_v55  ;;  %v3212_v2 = vpop.f32.mrb[21].mxu0 }
 0x837   :  { %v3218_v57 = vadd.f32 %v3212_v2, %v2982_v56  ;;  %v3214_v3 = vpop.f32.mrb[22].mxu0 }
 0x838   :  { %v3231_v58 = vadd.f32 %v3224_v60, %v3217_v63  ;;  %v3215_v4 = vpop.f32.mrb[23].mxu0 }
 0x839   :  { %v3232_v5 = vadd.f32 %v3228_v62, %v3218_v57 }
 0x83a   :  { %3233 = vst [vmem:[#allocation2] sm:$0xff] %v3231_v58 }
 0x83b   :  { %3234 = vst [vmem:[#allocation2 + $0x8] sm:$0xff] %v3232_v5 }
 0x83c   :  { %4609 = shalt.err (!%p4606_p4)
}
 0x83d   :  { %s4610_s10 = scalar_lea.hbm %s6027_s7, 256 }
 0x83e   :  { %p4611_p5 = scmp.ne.s32.totalorder %s6027_s7, %s4610_s10  ;;  %p4614_p6 = scmp.lt.u32.totalorder %s4610_s10, %s6027_s7 }
 0x840   :  { %p4616_p7 = pnand %p4614_p6, %p4611_p5 }
 0x842   :  { %4619 = shalt.err (!%p4616_p7)
}
 0x843   :  { %3244 = dma.vmem_to_hbm [thread:$0]  %s3242_s8, 256, %s6027_s7, [#allocation3]  }
 0x844   :  { %4620 = dma.done.wait [#allocation3], 256  }
 0x845   :  { %4621 = vsyncadd [#allocation3], 4294967040 }
 0x846   :  { %3248 = vsyncpa [#allocation3], 1 }

</bundles_post_ra>
